<compile_context>
chip_gen: v7x
topology: tpu7x:2x2x1
jax: 0.10.0
libtpu: 0.0.40
codegen_flags: <defaults>
</compile_context>

<pallas_src>
import functools

import jax
import jax.numpy as jnp
from jax.experimental import pallas as pl
from jax.experimental.pallas import tpu as pltpu


# --------------------------------------------------------------------------------------
# Generation-aware VMEM budgets
# --------------------------------------------------------------------------------------
_DEFAULT_VMEM = 64 * 1024 * 1024          # v7x physical VMEM (conservative default)
_TK_CAP = 2048                            # largest K tile
_TM_CAP = 2048                            # largest M tile


@functools.lru_cache(maxsize=None)
def _vmem_capacity_bytes():
    """Physical VMEM of the attached TPU (64 MiB on v7x, 128 MiB on v5e/v6e)."""
    try:
        cap = int(getattr(pltpu.get_tpu_info(), "vmem_capacity_bytes", 0) or 0)
        if cap > 0:
            return cap
    except Exception:
        pass
    return _DEFAULT_VMEM


def _tile_budget_bytes():
    # Double-buffered inputs/outputs + f32 accumulator get ~half of physical VMEM.
    return _vmem_capacity_bytes() // 2


def _vmem_limit_bytes():
    # Scoped-VMEM limit for Mosaic: above the 32 MiB default, below physical capacity.
    return min(int(_vmem_capacity_bytes() * 0.75), 100 * 1024 * 1024)


def _round_up(v, m):
    return (v + m - 1) // m * m


def _choose_tiles(M, K, Np, out_bytes, budget):
    """Pick (tm, tn, tk, Mp, Kp).

    Preferences: single K step (tk == K -> no accumulator, no K padding); tm dividing M
    (no M padding); tiles as large as the generation's VMEM budget allows; >= 2 parallel
    (M, N) blocks so both v7x TensorCores get work.
    """
    # ---- N tile: full if <= 512, else the largest 128-multiple divisor <= 512 ----
    if Np <= 512:
        tn = Np
    else:
        tn = 128
        for d in (512, 384, 256):
            if Np % d == 0:
                tn = d
                break

    # ---- K tile: full K (single reduction step) when small enough ----
    Kp = K
    if K <= _TK_CAP:
        tk = K
    else:
        if K % 128 != 0:
            Kp = _round_up(K, 128)        # rare; only for unusual channel counts
        tk = 128
        for d in range(min(_TK_CAP, Kp), 127, -128):
            if Kp % d == 0:
                tk = d
                break
    multi = tk < Kp

    # ---- M tile from the VMEM budget ----
    per_row = 4 * tk + 2 * tn * out_bytes + (4 * tn if multi else 0)  # A dbl, out dbl, acc
    fixed = 4 * tk * tn + 8 * tn                                      # B dbl-buf + bias
    tm_cap = max(16, (budget - fixed) // per_row)
    tm_cap = min(_TM_CAP, tm_cap)

    if M <= tm_cap:
        tm, Mp = M, M
        # Keep >= 2 parallel blocks (v7x megacore) when N has only one block.
        if Np == tn and M >= 256 and M % 16 == 0:
            tm = M // 2
    else:
        cap16 = max(16, (tm_cap // 16) * 16)
        tm = 0
        for t in range(cap16, 15, -16):   # largest multiple-of-16 tile dividing M
            if M % t == 0:
                tm = t
                break
        if tm:
            Mp = M
        else:
            tm = min(cap16, 1024)
            Mp = _round_up(M, tm)
    return tm, tn, tk, Mp, Kp


# --------------------------------------------------------------------------------------
# Pallas kernels:  out = post_act( pre_act(A) @ B + bias )
# --------------------------------------------------------------------------------------
def _epilogue(acc, bias, post_act):
    r = acc + bias                                    # (tm, tn) f32 + (1, tn) f32
    if post_act == "relu":
        r = jnp.maximum(r, 0.0)
    elif post_act == "sigmoid":
        # exp and the approximate reciprocal both ride the EUP slot.
        r = jnp.clip(pl.reciprocal(1.0 + jnp.exp(-r), approx=True), 0.0, 1.0)
    return r


def _gemm_single_kernel(a_ref, b_ref, bias_ref, o_ref, *, pre_act, post_act):
    """Single K step: no accumulator scratch, no predicated init/finalize."""
    a = a_ref[...]
    if pre_act == "leaky":        # only safe where A rows are not im2col-duplicated (1x1 conv)
        a = jnp.where(a > 0, a, a * 0.2)
    acc = jnp.dot(a, b_ref[...], preferred_element_type=jnp.float32)
    o_ref[...] = _epilogue(acc, bias_ref[...], post_act).astype(o_ref.dtype)


def _gemm_multik_kernel(a_ref, b_ref, bias_ref, o_ref, acc_ref, *, pre_act, post_act):
    """grid = (M/tm, N/tn, K/tk); K innermost ('arbitrary') with an f32 VMEM accumulator."""
    @pl.when(pl.program_id(2) == 0)
    def _init():
        acc_ref[...] = jnp.zeros_like(acc_ref)

    a = a_ref[...]
    if pre_act == "leaky":
        a = jnp.where(a > 0, a, a * 0.2)
    acc_ref[...] += jnp.dot(a, b_ref[...], preferred_element_type=jnp.float32)

    @pl.when(pl.program_id(2) == pl.num_programs(2) - 1)
    def _finalize():
        o_ref[...] = _epilogue(acc_ref[...], bias_ref[...], post_act).astype(o_ref.dtype)


def fused_gemm(a, pack, n_out, pre_act="none", post_act="none", out_dtype=jnp.bfloat16):
    """a: (M, K) bf16; pack['w']: (K, Np) bf16 (pre-packed); pack['b']: (1, Np) f32.

    Returns (M, n_out).  Matmul + bias + activation epilogue in one tiled Pallas kernel.
    """
    w, bias = pack["w"], pack["b"]
    M, K = a.shape
    Kw, Np = w.shape
    assert Kw == K, (Kw, K)
    out_bytes = jnp.dtype(out_dtype).itemsize

    tm, tn, tk, Mp, Kp = _choose_tiles(M, K, Np, out_bytes, _tile_budget_bytes())
    multi = tk < Kp

    a = a.astype(jnp.bfloat16)
    if Mp != M or Kp != K:
        # Rare path (odd channel counts / indivisible M).  TODO(synk): fold into im2col.
        a = jnp.pad(a, ((0, Mp - M), (0, Kp - K)))
    if Kp != K:
        w = jnp.pad(w, ((0, Kp - K), (0, 0)))

    cost = pl.CostEstimate(
        flops=int(2 * Mp * Np * Kp),
        transcendentals=int(Mp * Np) if post_act == "sigmoid" else 0,
        bytes_accessed=int(a.size * 2 + w.size * 2 + bias.size * 4 + Mp * Np * out_bytes),
    )

    if multi:
        grid = (Mp // tm, Np // tn, Kp // tk)
        kernel = functools.partial(_gemm_multik_kernel, pre_act=pre_act, post_act=post_act)
        in_specs = [
            pl.BlockSpec((tm, tk), lambda i, j, k: (i, k)),
            pl.BlockSpec((tk, tn), lambda i, j, k: (k, j)),
            pl.BlockSpec((1, tn), lambda i, j, k: (0, j)),
        ]
        out_spec = pl.BlockSpec((tm, tn), lambda i, j, k: (i, j))
        scratch = [pltpu.VMEM((tm, tn), jnp.float32)]
        sem = ("parallel", "parallel", "arbitrary")
    else:
        grid = (Mp // tm, Np // tn)
        kernel = functools.partial(_gemm_single_kernel, pre_act=pre_act, post_act=post_act)
        in_specs = [
            pl.BlockSpec((tm, tk), lambda i, j: (i, 0)),
            pl.BlockSpec((tk, tn), lambda i, j: (0, j)),
            pl.BlockSpec((1, tn), lambda i, j: (0, j)),
        ]
        out_spec = pl.BlockSpec((tm, tn), lambda i, j: (i, j))
        scratch = []
        sem = ("parallel", "parallel")

    out = pl.pallas_call(
        kernel,
        out_shape=jax.ShapeDtypeStruct((Mp, Np), out_dtype),
        grid_spec=pltpu.PrefetchScalarGridSpec(
            num_scalar_prefetch=0,
            grid=grid,
            in_specs=in_specs,
            out_specs=out_spec,
            scratch_shapes=scratch,
        ),
        compiler_params=pltpu.CompilerParams(
            dimension_semantics=sem,
            vmem_limit_bytes=_vmem_limit_bytes(),
        ),
        cost_estimate=cost,
    )(a, w, bias)

    if Mp != M or Np != n_out:
        out = out[:M, :n_out]
    return out


# --------------------------------------------------------------------------------------
# Weight packing (done ONCE at parameter-init time)
# --------------------------------------------------------------------------------------
def _pack_weights(bmat, bias):
    """bmat: (K, N) f32 -> bf16, N padded to 128; bias -> (1, Np) f32.  K left unpadded."""
    k, n = bmat.shape
    np_ = _round_up(n, 128)
    w = jnp.zeros((k, np_), jnp.bfloat16).at[:, :n].set(bmat.astype(jnp.bfloat16))
    b = jnp.zeros((1, np_), jnp.float32).at[0, :n].set(bias.astype(jnp.float32))
    return {"w": w, "b": b}


def pack_down_conv(w, b):
    """Conv2d weight (Cout, Cin, 3, 3) -> (9*Cin, Cout) in (ky, kx, ci) row order."""
    cout, cin = w.shape[0], w.shape[1]
    bmat = jnp.transpose(w, (2, 3, 1, 0)).reshape(9 * cin, cout)
    return _pack_weights(bmat, b)


def pack_conv1x1(w, b):
    """Conv2d weight (Cout, Cin, 1, 1) -> (Cin, Cout)."""
    cout, cin = w.shape[0], w.shape[1]
    return _pack_weights(w.reshape(cout, cin).T, b)


def pack_conv_transpose(w, b):
    """ConvTranspose2d(k=4, s=2, p=1) weight (Cin, Cout, 4, 4) -> (9*Cin, 4*Cout).

    Output pixel (2m+pa, 2n+pb) only sees the 3x3 zero-padded input window centred at
    (m, n); for parity (pa, pb) the 2x2 active taps inside that window are
    (ry, rx) = (pa+dy, pb+dx), dy,dx in {0,1}, with kernel taps ky=(3-pa)-2dy, kx=(3-pb)-2dx.
    Packing all 4 parities side-by-side (zeros on inactive taps) lets ONE 3x3 im2col feed
    the whole transposed conv as a single wide GEMM (N = 4*Cout).
    """
    cin, cout = w.shape[0], w.shape[1]
    wall = jnp.zeros((3, 3, cin, 4, cout), jnp.float32)
    for pa in range(2):
        for pb in range(2):
            p4 = 2 * pa + pb
            for dy in range(2):
                for dx in range(2):
                    wall = wall.at[pa + dy, pb + dx, :, p4, :].set(
                        w[:, :, (3 - pa) - 2 * dy, (3 - pb) - 2 * dx])
    ball = jnp.concatenate([b] * 4, axis=0)
    return _pack_weights(wall.reshape(9 * cin, 4 * cout), ball)


# --------------------------------------------------------------------------------------
# Layer lowerings (patch extraction in jnp; matmul/bias/activation in the Pallas GEMM)
# --------------------------------------------------------------------------------------
def _leaky(x):
    return jnp.where(x > 0, x, 0.2 * x)


def _relu(x):
    return jnp.maximum(x, 0)


def _im2col(xp, kh, kw, stride):
    """xp: (N, Hp, Wp, C) -> (N*Ho*Wo, kh*kw*C) in (ky, kx, c) order."""
    n, hp, wp, c = xp.shape
    ho = (hp - kh) // stride + 1
    wo = (wp - kw) // stride + 1
    cols = [xp[:, ky::stride, kx::stride, :][:, :ho, :wo, :]
            for ky in range(kh) for kx in range(kw)]
    patches = jnp.stack(cols, axis=3)                       # (N, Ho, Wo, kh*kw, C)
    return patches.reshape(n * ho * wo, kh * kw * c), (n, ho, wo)


def down_conv(x, pack, cout):
    """ReplicationPad2d(1) + Conv2d(k=3, s=2, p=0)."""
    xp = jnp.pad(x, ((0, 0), (1, 1), (1, 1), (0, 0)), mode="edge")
    patches, (n, ho, wo) = _im2col(xp, 3, 3, 2)
    out = fused_gemm(patches, pack, cout)
    return out.reshape(n, ho, wo, cout)


def conv1x1(x, pack, cout, pre_act, post_act):
    """Conv2d(k=1, s=1) with fused pre/post activations (innermost block)."""
    n, h, w, c = x.shape
    out = fused_gemm(x.reshape(n * h * w, c), pack, cout, pre_act=pre_act, post_act=post_act)
    return out.reshape(n, h, w, cout)


def up_conv_transpose(x, pack, cout, post_act="none", out_dtype=jnp.bfloat16):
    """ConvTranspose2d(k=4, s=2, p=1) as one 3x3-im2col GEMM over all 4 output parities."""
    n, h, w, c = x.shape
    xp = jnp.pad(x, ((0, 0), (1, 1), (1, 1), (0, 0)))       # zero pad (conv-transpose)
    patches, _ = _im2col(xp, 3, 3, 1)                       # (n*h*w, 9*c)
    out = fused_gemm(patches, pack, 4 * cout, post_act=post_act, out_dtype=out_dtype)
    y = out.reshape(n, h, w, 2, 2, cout)                    # (.., pa, pb, c)
    y = jnp.transpose(y, (0, 1, 3, 2, 4, 5)).reshape(n, 2 * h, 2 * w, cout)
    return y


def _crop_like(x_out, ref):
    """`padding` module: negative ReplicationPad2d only ever crops from bottom/right."""
    return x_out[:, : ref.shape[1], : ref.shape[2], :]


# --------------------------------------------------------------------------------------
# Full forward of the nested UnetBlockShallow stack
# --------------------------------------------------------------------------------------
def unet_forward(params, x_nchw, *, ngf, output_nc):
    x = jnp.transpose(x_nchw, (0, 2, 3, 1)).astype(jnp.bfloat16)   # NCHW -> NHWC, bf16

    # ----- encoder (outermost downconv has no LeakyReLU) -----
    e0 = down_conv(x, params["d0"], ngf)                        # H/2
    e1 = down_conv(_leaky(e0), params["d1"], 2 * ngf)           # H/4
    e2 = down_conv(_leaky(e1), params["d2"], 4 * ngf)           # H/8
    e3 = down_conv(_leaky(e2), params["d3"], 8 * ngf)           # H/16

    # ----- innermost: LeakyReLU -> Conv1x1 -> ReLU (single fused GEMM) -----
    m = conv1x1(e3, params["inner"], 16 * ngf, pre_act="leaky", post_act="relu")

    # ----- decoder: ReLU (fused into ConvT epilogue / applied once on the skip),
    #       ConvT4x4/s2/p1 (parity-packed GEMM), crop, channel concat -----
    # block3's uprelu on m is ReLU(ReLU(.)) == m, so it is omitted (identical math).
    # ReLU(cat([crop(u), skip])) == cat([crop(ReLU(u)), ReLU(skip)]).
    u3 = up_conv_transpose(m, params["u3"], 4 * ngf, post_act="relu")
    c3 = jnp.concatenate([_crop_like(u3, e2), _relu(e2)], axis=-1)        # 8ngf
    u2 = up_conv_transpose(c3, params["u2"], 2 * ngf, post_act="relu")
    c2 = jnp.concatenate([_crop_like(u2, e1), _relu(e1)], axis=-1)        # 4ngf
    u1 = up_conv_transpose(c2, params["u1"], ngf, post_act="relu")
    c1 = jnp.concatenate([_crop_like(u1, e0), _relu(e0)], axis=-1)        # 2ngf

    # ----- outermost up: ConvT -> Sigmoid (both fused in the final GEMM) -----
    y = up_conv_transpose(c1, params["u0"], output_nc, post_act="sigmoid",
                          out_dtype=jnp.float32)
    return jnp.transpose(y, (0, 3, 1, 2))                        # NHWC -> NCHW


# --------------------------------------------------------------------------------------
# Deterministic parameter init (PyTorch layouts), then pre-packed for the Pallas GEMM
# --------------------------------------------------------------------------------------
def _conv_init(key, cout, cin, k):
    kw, kb = jax.random.split(key)
    scale = 1.0 / (cin * k * k) ** 0.5
    w = jax.random.uniform(kw, (cout, cin, k, k), jnp.float32, -scale, scale)
    b = jax.random.uniform(kb, (cout,), jnp.float32, -scale, scale)
    return w, b


def _convT_init(key, cin, cout, k):
    kw, kb = jax.random.split(key)
    scale = 1.0 / (cout * k * k) ** 0.5
    w = jax.random.uniform(kw, (cin, cout, k, k), jnp.float32, -scale, scale)
    b = jax.random.uniform(kb, (cout,), jnp.float32, -scale, scale)
    return w, b


def init_params(key, in_ch, output_nc, ngf):
    ks = jax.random.split(key, 9)
    return {
        # encoder: ReplicationPad + Conv3x3/s2
        "d0": pack_down_conv(*_conv_init(ks[0], ngf, in_ch, 3)),
        "d1": pack_down_conv(*_conv_init(ks[1], 2 * ngf, ngf, 3)),
        "d2": pack_down_conv(*_conv_init(ks[2], 4 * ngf, 2 * ngf, 3)),
        "d3": pack_down_conv(*_conv_init(ks[3], 8 * ngf, 4 * ngf, 3)),
        # innermost: Conv1x1 (8ngf -> 16ngf)
        "inner": pack_conv1x1(*_conv_init(ks[4], 16 * ngf, 8 * ngf, 1)),
        # decoder: ConvTranspose2d(k=4, s=2, p=1), parity-packed
        "u3": pack_conv_transpose(*_convT_init(ks[5], 16 * ngf, 4 * ngf, 4)),
        "u2": pack_conv_transpose(*_convT_init(ks[6], 8 * ngf, 2 * ngf, 4)),
        "u1": pack_conv_transpose(*_convT_init(ks[7], 4 * ngf, ngf, 4)),
        "u0": pack_conv_transpose(*_convT_init(ks[8], 2 * ngf, output_nc, 4)),
    }


if __name__ == "__main__":
    key = jax.random.PRNGKey(0)
    N, in_ch, output_nc, ngf, H, W = 2, 4, 3, 8, 16, 16

    params = init_params(key, in_ch, output_nc, ngf)
    x = jax.random.normal(jax.random.fold_in(key, 123), (N, in_ch, H, W), jnp.float32)

    fwd = jax.jit(functools.partial(unet_forward, ngf=ngf, output_nc=output_nc))
    y = jax.block_until_ready(fwd(params, x))

    assert y.shape == (N, output_nc, H, W), y.shape
    assert bool(jnp.all(jnp.isfinite(y)))
    assert bool(jnp.all((y >= 0.0) & (y <= 1.0)))   # sigmoid output range
    print("KERNEL_OK")
</pallas_src>

<mosaic_0001>
module attributes {stable_mosaic.version = 11 : i64} {
  func.func @_gemm_single_kernel(%arg0: i32, %arg1: i32, %arg2: memref<128x36xbf16, #tpu.memory_space<vmem>>, %arg3: memref<36x128xbf16, #tpu.memory_space<vmem>>, %arg4: memref<1x128xf32, #tpu.memory_space<vmem>>, %arg5: memref<128x128xbf16, #tpu.memory_space<vmem>>) attributes {dimension_semantics = [#tpu.dimension_semantics<parallel>, #tpu.dimension_semantics<parallel>], iteration_bounds = array<i64: 1, 1>, scalar_prefetch = 0 : i64, scratch_operands = 0 : i64, tpu.core_type = #tpu.core_type<tc>, window_params = [{transform_indices = @transform_0, window_bounds = array<i64: 128, 36>}, {transform_indices = @transform_1, window_bounds = array<i64: 36, 128>}, {transform_indices = @transform_2, window_bounds = array<i64: 1, 128>}, {transform_indices = @transform_3, window_bounds = array<i64: 128, 128>}]} {
    %c0 = arith.constant 0 : index
    %c0_0 = arith.constant 0 : index
    %0 = vector.load %arg2[%c0, %c0_0] : memref<128x36xbf16, #tpu.memory_space<vmem>>, vector<128x36xbf16>
    %c0_1 = arith.constant 0 : index
    %c0_2 = arith.constant 0 : index
    %1 = vector.load %arg3[%c0_1, %c0_2] : memref<36x128xbf16, #tpu.memory_space<vmem>>, vector<36x128xbf16>
    %cst = arith.constant dense<0.000000e+00> : vector<128x128xf32>
    %2 = tpu.matmul %0, %1, %cst {dimension_numbers = #tpu.dot_dimension_numbers<[1], [0], [0], [1], [0, 0, 1, 1], [], []>} : vector<128x36xbf16>, vector<36x128xbf16>, vector<128x128xf32> -> vector<128x128xf32>
    %c0_3 = arith.constant 0 : index
    %c0_4 = arith.constant 0 : index
    %3 = vector.load %arg4[%c0_3, %c0_4] : memref<1x128xf32, #tpu.memory_space<vmem>>, vector<1x128xf32>
    %4 = vector.broadcast %3 : vector<1x128xf32> to vector<128x128xf32>
    %5 = arith.addf %2, %4 : vector<128x128xf32>
    %6 = arith.truncf %5 : vector<128x128xf32> to vector<128x128xbf16>
    %c0_5 = arith.constant 0 : index
    %c0_6 = arith.constant 0 : index
    %7 = vector.load %arg5[%c0_5, %c0_6] : memref<128x128xbf16, #tpu.memory_space<vmem>>, vector<128x128xbf16>
    tpu.vector_store %arg5[%c0_5, %c0_6], %6 {strides = array<i32>} : memref<128x128xbf16, #tpu.memory_space<vmem>>, vector<128x128xbf16>,
    return
  }
  func.func @transform_0(%arg0: i32, %arg1: i32) -> (i32, i32) {
    %c0_i32 = arith.constant 0 : i32
    %c0_i32_0 = arith.constant 0 : i32
    return %arg0, %c0_i32 : i32, i32
  }
  func.func @transform_1(%arg0: i32, %arg1: i32) -> (i32, i32) {
    %c0_i32 = arith.constant 0 : i32
    %c0_i32_0 = arith.constant 0 : i32
    return %c0_i32, %arg1 : i32, i32
  }
  func.func @transform_2(%arg0: i32, %arg1: i32) -> (i32, i32) {
    %c0_i32 = arith.constant 0 : i32
    %c0_i32_0 = arith.constant 0 : i32
    return %c0_i32, %arg1 : i32, i32
  }
  func.func @transform_3(%arg0: i32, %arg1: i32) -> (i32, i32) {
    %c0_i32 = arith.constant 0 : i32
    return %arg0, %arg1 : i32, i32
  }
}

module attributes {stable_mosaic.version = 11 : i64} {
  func.func @_gemm_single_kernel(%arg0: i32, %arg1: i32, %arg2: memref<32x72xbf16, #tpu.memory_space<vmem>>, %arg3: memref<72x128xbf16, #tpu.memory_space<vmem>>, %arg4: memref<1x128xf32, #tpu.memory_space<vmem>>, %arg5: memref<32x128xbf16, #tpu.memory_space<vmem>>) attributes {dimension_semantics = [#tpu.dimension_semantics<parallel>, #tpu.dimension_semantics<parallel>], iteration_bounds = array<i64: 1, 1>, scalar_prefetch = 0 : i64, scratch_operands = 0 : i64, tpu.core_type = #tpu.core_type<tc>, window_params = [{transform_indices = @transform_0, window_bounds = array<i64: 32, 72>}, {transform_indices = @transform_1, window_bounds = array<i64: 72, 128>}, {transform_indices = @transform_2, window_bounds = array<i64: 1, 128>}, {transform_indices = @transform_3, window_bounds = array<i64: 32, 128>}]} {
    %c0 = arith.constant 0 : index
    %c0_0 = arith.constant 0 : index
    %0 = vector.load %arg2[%c0, %c0_0] : memref<32x72xbf16, #tpu.memory_space<vmem>>, vector<32x72xbf16>
    %c0_1 = arith.constant 0 : index
    %c0_2 = arith.constant 0 : index
    %1 = vector.load %arg3[%c0_1, %c0_2] : memref<72x128xbf16, #tpu.memory_space<vmem>>, vector<72x128xbf16>
    %cst = arith.constant dense<0.000000e+00> : vector<32x128xf32>
    %2 = tpu.matmul %0, %1, %cst {dimension_numbers = #tpu.dot_dimension_numbers<[1], [0], [0], [1], [0, 0, 1, 1], [], []>} : vector<32x72xbf16>, vector<72x128xbf16>, vector<32x128xf32> -> vector<32x128xf32>
    %c0_3 = arith.constant 0 : index
    %c0_4 = arith.constant 0 : index
    %3 = vector.load %arg4[%c0_3, %c0_4] : memref<1x128xf32, #tpu.memory_space<vmem>>, vector<1x128xf32>
    %4 = vector.broadcast %3 : vector<1x128xf32> to vector<32x128xf32>
    %5 = arith.addf %2, %4 : vector<32x128xf32>
    %6 = arith.truncf %5 : vector<32x128xf32> to vector<32x128xbf16>
    %c0_5 = arith.constant 0 : index
    %c0_6 = arith.constant 0 : index
    %7 = vector.load %arg5[%c0_5, %c0_6] : memref<32x128xbf16, #tpu.memory_space<vmem>>, vector<32x128xbf16>
    tpu.vector_store %arg5[%c0_5, %c0_6], %6 {strides = array<i32>} : memref<32x128xbf16, #tpu.memory_space<vmem>>, vector<32x128xbf16>,
    return
  }
  func.func @transform_0(%arg0: i32, %arg1: i32) -> (i32, i32) {
    %c0_i32 = arith.constant 0 : i32
    %c0_i32_0 = arith.constant 0 : i32
    return %arg0, %c0_i32 : i32, i32
  }
  func.func @transform_1(%arg0: i32, %arg1: i32) -> (i32, i32) {
    %c0_i32 = arith.constant 0 : i32
    %c0_i32_0 = arith.constant 0 : i32
    return %c0_i32, %arg1 : i32, i32
  }
  func.func @transform_2(%arg0: i32, %arg1: i32) -> (i32, i32) {
    %c0_i32 = arith.constant 0 : i32
    %c0_i32_0 = arith.constant 0 : i32
    return %c0_i32, %arg1 : i32, i32
  }
  func.func @transform_3(%arg0: i32, %arg1: i32) -> (i32, i32) {
    %c0_i32 = arith.constant 0 : i32
    return %arg0, %arg1 : i32, i32
  }
}

module attributes {stable_mosaic.version = 11 : i64} {
  func.func @_gemm_single_kernel(%arg0: i32, %arg1: i32, %arg2: memref<8x144xbf16, #tpu.memory_space<vmem>>, %arg3: memref<144x128xbf16, #tpu.memory_space<vmem>>, %arg4: memref<1x128xf32, #tpu.memory_space<vmem>>, %arg5: memref<8x128xbf16, #tpu.memory_space<vmem>>) attributes {dimension_semantics = [#tpu.dimension_semantics<parallel>, #tpu.dimension_semantics<parallel>], iteration_bounds = array<i64: 1, 1>, scalar_prefetch = 0 : i64, scratch_operands = 0 : i64, tpu.core_type = #tpu.core_type<tc>, window_params = [{transform_indices = @transform_0, window_bounds = array<i64: 8, 144>}, {transform_indices = @transform_1, window_bounds = array<i64: 144, 128>}, {transform_indices = @transform_2, window_bounds = array<i64: 1, 128>}, {transform_indices = @transform_3, window_bounds = array<i64: 8, 128>}]} {
    %c0 = arith.constant 0 : index
    %c0_0 = arith.constant 0 : index
    %0 = vector.load %arg2[%c0, %c0_0] : memref<8x144xbf16, #tpu.memory_space<vmem>>, vector<8x144xbf16>
    %c0_1 = arith.constant 0 : index
    %c0_2 = arith.constant 0 : index
    %1 = vector.load %arg3[%c0_1, %c0_2] : memref<144x128xbf16, #tpu.memory_space<vmem>>, vector<144x128xbf16>
    %cst = arith.constant dense<0.000000e+00> : vector<8x128xf32>
    %2 = tpu.matmul %0, %1, %cst {dimension_numbers = #tpu.dot_dimension_numbers<[1], [0], [0], [1], [0, 0, 1, 1], [], []>} : vector<8x144xbf16>, vector<144x128xbf16>, vector<8x128xf32> -> vector<8x128xf32>
    %c0_3 = arith.constant 0 : index
    %c0_4 = arith.constant 0 : index
    %3 = vector.load %arg4[%c0_3, %c0_4] : memref<1x128xf32, #tpu.memory_space<vmem>>, vector<1x128xf32>
    %4 = vector.broadcast %3 : vector<1x128xf32> to vector<8x128xf32>
    %5 = arith.addf %2, %4 : vector<8x128xf32>
    %6 = arith.truncf %5 : vector<8x128xf32> to vector<8x128xbf16>
    %c0_5 = arith.constant 0 : index
    %c0_6 = arith.constant 0 : index
    %7 = vector.load %arg5[%c0_5, %c0_6] : memref<8x128xbf16, #tpu.memory_space<vmem>>, vector<8x128xbf16>
    tpu.vector_store %arg5[%c0_5, %c0_6], %6 {strides = array<i32>} : memref<8x128xbf16, #tpu.memory_space<vmem>>, vector<8x128xbf16>,
    return
  }
  func.func @transform_0(%arg0: i32, %arg1: i32) -> (i32, i32) {
    %c0_i32 = arith.constant 0 : i32
    %c0_i32_0 = arith.constant 0 : i32
    return %arg0, %c0_i32 : i32, i32
  }
  func.func @transform_1(%arg0: i32, %arg1: i32) -> (i32, i32) {
    %c0_i32 = arith.constant 0 : i32
    %c0_i32_0 = arith.constant 0 : i32
    return %c0_i32, %arg1 : i32, i32
  }
  func.func @transform_2(%arg0: i32, %arg1: i32) -> (i32, i32) {
    %c0_i32 = arith.constant 0 : i32
    %c0_i32_0 = arith.constant 0 : i32
    return %c0_i32, %arg1 : i32, i32
  }
  func.func @transform_3(%arg0: i32, %arg1: i32) -> (i32, i32) {
    %c0_i32 = arith.constant 0 : i32
    return %arg0, %arg1 : i32, i32
  }
}

module attributes {stable_mosaic.version = 11 : i64} {
  func.func @_gemm_single_kernel(%arg0: i32, %arg1: i32, %arg2: memref<2x64xbf16, #tpu.memory_space<vmem>>, %arg3: memref<64x128xbf16, #tpu.memory_space<vmem>>, %arg4: memref<1x128xf32, #tpu.memory_space<vmem>>, %arg5: memref<2x128xbf16, #tpu.memory_space<vmem>>) attributes {dimension_semantics = [#tpu.dimension_semantics<parallel>, #tpu.dimension_semantics<parallel>], iteration_bounds = array<i64: 1, 1>, scalar_prefetch = 0 : i64, scratch_operands = 0 : i64, tpu.core_type = #tpu.core_type<tc>, window_params = [{transform_indices = @transform_0, window_bounds = array<i64: 2, 64>}, {transform_indices = @transform_1, window_bounds = array<i64: 64, 128>}, {transform_indices = @transform_2, window_bounds = array<i64: 1, 128>}, {transform_indices = @transform_3, window_bounds = array<i64: 2, 128>}]} {
    %c0 = arith.constant 0 : index
    %c0_0 = arith.constant 0 : index
    %0 = vector.load %arg2[%c0, %c0_0] : memref<2x64xbf16, #tpu.memory_space<vmem>>, vector<2x64xbf16>
    %cst = arith.constant 0.000000e+00 : bf16
    %1 = vector.broadcast %cst : bf16 to vector<2x64xbf16>
    %2 = arith.cmpf ogt, %0, %1 : vector<2x64xbf16>
    %cst_1 = arith.constant 2.001950e-01 : bf16
    %3 = vector.broadcast %cst_1 : bf16 to vector<2x64xbf16>
    %4 = arith.mulf %0, %3 : vector<2x64xbf16>
    %5 = arith.select %2, %0, %4 : vector<2x64xi1>, vector<2x64xbf16>
    %c0_2 = arith.constant 0 : index
    %c0_3 = arith.constant 0 : index
    %6 = vector.load %arg3[%c0_2, %c0_3] : memref<64x128xbf16, #tpu.memory_space<vmem>>, vector<64x128xbf16>
    %cst_4 = arith.constant dense<0.000000e+00> : vector<2x128xf32>
    %7 = tpu.matmul %5, %6, %cst_4 {dimension_numbers = #tpu.dot_dimension_numbers<[1], [0], [0], [1], [0, 0, 1, 1], [], []>} : vector<2x64xbf16>, vector<64x128xbf16>, vector<2x128xf32> -> vector<2x128xf32>
    %c0_5 = arith.constant 0 : index
    %c0_6 = arith.constant 0 : index
    %8 = vector.load %arg4[%c0_5, %c0_6] : memref<1x128xf32, #tpu.memory_space<vmem>>, vector<1x128xf32>
    %9 = vector.broadcast %8 : vector<1x128xf32> to vector<2x128xf32>
    %10 = arith.addf %7, %9 : vector<2x128xf32>
    %cst_7 = arith.constant 0.000000e+00 : f32
    %11 = vector.broadcast %cst_7 : f32 to vector<2x128xf32>
    %12 = arith.maximumf %10, %11 : vector<2x128xf32>
    %13 = arith.truncf %12 : vector<2x128xf32> to vector<2x128xbf16>
    %c0_8 = arith.constant 0 : index
    %c0_9 = arith.constant 0 : index
    %14 = vector.load %arg5[%c0_8, %c0_9] : memref<2x128xbf16, #tpu.memory_space<vmem>>, vector<2x128xbf16>
    tpu.vector_store %arg5[%c0_8, %c0_9], %13 {strides = array<i32>} : memref<2x128xbf16, #tpu.memory_space<vmem>>, vector<2x128xbf16>,
    return
  }
  func.func @transform_0(%arg0: i32, %arg1: i32) -> (i32, i32) {
    %c0_i32 = arith.constant 0 : i32
    %c0_i32_0 = arith.constant 0 : i32
    return %arg0, %c0_i32 : i32, i32
  }
  func.func @transform_1(%arg0: i32, %arg1: i32) -> (i32, i32) {
    %c0_i32 = arith.constant 0 : i32
    %c0_i32_0 = arith.constant 0 : i32
    return %c0_i32, %arg1 : i32, i32
  }
  func.func @transform_2(%arg0: i32, %arg1: i32) -> (i32, i32) {
    %c0_i32 = arith.constant 0 : i32
    %c0_i32_0 = arith.constant 0 : i32
    return %c0_i32, %arg1 : i32, i32
  }
  func.func @transform_3(%arg0: i32, %arg1: i32) -> (i32, i32) {
    %c0_i32 = arith.constant 0 : i32
    return %arg0, %arg1 : i32, i32
  }
}

module attributes {stable_mosaic.version = 11 : i64} {
  func.func @_gemm_single_kernel(%arg0: i32, %arg1: i32, %arg2: memref<2x288xbf16, #tpu.memory_space<vmem>>, %arg3: memref<288x128xbf16, #tpu.memory_space<vmem>>, %arg4: memref<1x128xf32, #tpu.memory_space<vmem>>, %arg5: memref<2x128xbf16, #tpu.memory_space<vmem>>) attributes {dimension_semantics = [#tpu.dimension_semantics<parallel>, #tpu.dimension_semantics<parallel>], iteration_bounds = array<i64: 1, 1>, scalar_prefetch = 0 : i64, scratch_operands = 0 : i64, tpu.core_type = #tpu.core_type<tc>, window_params = [{transform_indices = @transform_0, window_bounds = array<i64: 2, 288>}, {transform_indices = @transform_1, window_bounds = array<i64: 288, 128>}, {transform_indices = @transform_2, window_bounds = array<i64: 1, 128>}, {transform_indices = @transform_3, window_bounds = array<i64: 2, 128>}]} {
    %c0 = arith.constant 0 : index
    %c0_0 = arith.constant 0 : index
    %0 = vector.load %arg2[%c0, %c0_0] : memref<2x288xbf16, #tpu.memory_space<vmem>>, vector<2x288xbf16>
    %c0_1 = arith.constant 0 : index
    %c0_2 = arith.constant 0 : index
    %1 = vector.load %arg3[%c0_1, %c0_2] : memref<288x128xbf16, #tpu.memory_space<vmem>>, vector<288x128xbf16>
    %cst = arith.constant dense<0.000000e+00> : vector<2x128xf32>
    %2 = tpu.matmul %0, %1, %cst {dimension_numbers = #tpu.dot_dimension_numbers<[1], [0], [0], [1], [0, 0, 1, 1], [], []>} : vector<2x288xbf16>, vector<288x128xbf16>, vector<2x128xf32> -> vector<2x128xf32>
    %c0_3 = arith.constant 0 : index
    %c0_4 = arith.constant 0 : index
    %3 = vector.load %arg4[%c0_3, %c0_4] : memref<1x128xf32, #tpu.memory_space<vmem>>, vector<1x128xf32>
    %4 = vector.broadcast %3 : vector<1x128xf32> to vector<2x128xf32>
    %5 = arith.addf %2, %4 : vector<2x128xf32>
    %6 = arith.truncf %5 : vector<2x128xf32> to vector<2x128xbf16>
    %c0_5 = arith.constant 0 : index
    %c0_6 = arith.constant 0 : index
    %7 = vector.load %arg5[%c0_5, %c0_6] : memref<2x128xbf16, #tpu.memory_space<vmem>>, vector<2x128xbf16>
    tpu.vector_store %arg5[%c0_5, %c0_6], %6 {strides = array<i32>} : memref<2x128xbf16, #tpu.memory_space<vmem>>, vector<2x128xbf16>,
    return
  }
  func.func @transform_0(%arg0: i32, %arg1: i32) -> (i32, i32) {
    %c0_i32 = arith.constant 0 : i32
    %c0_i32_0 = arith.constant 0 : i32
    return %arg0, %c0_i32 : i32, i32
  }
  func.func @transform_1(%arg0: i32, %arg1: i32) -> (i32, i32) {
    %c0_i32 = arith.constant 0 : i32
    %c0_i32_0 = arith.constant 0 : i32
    return %c0_i32, %arg1 : i32, i32
  }
  func.func @transform_2(%arg0: i32, %arg1: i32) -> (i32, i32) {
    %c0_i32 = arith.constant 0 : i32
    %c0_i32_0 = arith.constant 0 : i32
    return %c0_i32, %arg1 : i32, i32
  }
  func.func @transform_3(%arg0: i32, %arg1: i32) -> (i32, i32) {
    %c0_i32 = arith.constant 0 : i32
    return %arg0, %arg1 : i32, i32
  }
}

module attributes {stable_mosaic.version = 11 : i64} {
  func.func @_gemm_single_kernel(%arg0: i32, %arg1: i32, %arg2: memref<2x1152xbf16, #tpu.memory_space<vmem>>, %arg3: memref<1152x128xbf16, #tpu.memory_space<vmem>>, %arg4: memref<1x128xf32, #tpu.memory_space<vmem>>, %arg5: memref<2x128xbf16, #tpu.memory_space<vmem>>) attributes {dimension_semantics = [#tpu.dimension_semantics<parallel>, #tpu.dimension_semantics<parallel>], iteration_bounds = array<i64: 1, 1>, scalar_prefetch = 0 : i64, scratch_operands = 0 : i64, tpu.core_type = #tpu.core_type<tc>, window_params = [{transform_indices = @transform_0, window_bounds = array<i64: 2, 1152>}, {transform_indices = @transform_1, window_bounds = array<i64: 1152, 128>}, {transform_indices = @transform_2, window_bounds = array<i64: 1, 128>}, {transform_indices = @transform_3, window_bounds = array<i64: 2, 128>}]} {
    %c0 = arith.constant 0 : index
    %c0_0 = arith.constant 0 : index
    %0 = vector.load %arg2[%c0, %c0_0] : memref<2x1152xbf16, #tpu.memory_space<vmem>>, vector<2x1152xbf16>
    %c0_1 = arith.constant 0 : index
    %c0_2 = arith.constant 0 : index
    %1 = vector.load %arg3[%c0_1, %c0_2] : memref<1152x128xbf16, #tpu.memory_space<vmem>>, vector<1152x128xbf16>
    %cst = arith.constant dense<0.000000e+00> : vector<2x128xf32>
    %2 = tpu.matmul %0, %1, %cst {dimension_numbers = #tpu.dot_dimension_numbers<[1], [0], [0], [1], [0, 0, 1, 1], [], []>} : vector<2x1152xbf16>, vector<1152x128xbf16>, vector<2x128xf32> -> vector<2x128xf32>
    %c0_3 = arith.constant 0 : index
    %c0_4 = arith.constant 0 : index
    %3 = vector.load %arg4[%c0_3, %c0_4] : memref<1x128xf32, #tpu.memory_space<vmem>>, vector<1x128xf32>
    %4 = vector.broadcast %3 : vector<1x128xf32> to vector<2x128xf32>
    %5 = arith.addf %2, %4 : vector<2x128xf32>
    %cst_5 = arith.constant 0.000000e+00 : f32
    %6 = vector.broadcast %cst_5 : f32 to vector<2x128xf32>
    %7 = arith.maximumf %5, %6 : vector<2x128xf32>
    %8 = arith.truncf %7 : vector<2x128xf32> to vector<2x128xbf16>
    %c0_6 = arith.constant 0 : index
    %c0_7 = arith.constant 0 : index
    %9 = vector.load %arg5[%c0_6, %c0_7] : memref<2x128xbf16, #tpu.memory_space<vmem>>, vector<2x128xbf16>
    tpu.vector_store %arg5[%c0_6, %c0_7], %8 {strides = array<i32>} : memref<2x128xbf16, #tpu.memory_space<vmem>>, vector<2x128xbf16>,
    return
  }
  func.func @transform_0(%arg0: i32, %arg1: i32) -> (i32, i32) {
    %c0_i32 = arith.constant 0 : i32
    %c0_i32_0 = arith.constant 0 : i32
    return %arg0, %c0_i32 : i32, i32
  }
  func.func @transform_1(%arg0: i32, %arg1: i32) -> (i32, i32) {
    %c0_i32 = arith.constant 0 : i32
    %c0_i32_0 = arith.constant 0 : i32
    return %c0_i32, %arg1 : i32, i32
  }
  func.func @transform_2(%arg0: i32, %arg1: i32) -> (i32, i32) {
    %c0_i32 = arith.constant 0 : i32
    %c0_i32_0 = arith.constant 0 : i32
    return %c0_i32, %arg1 : i32, i32
  }
  func.func @transform_3(%arg0: i32, %arg1: i32) -> (i32, i32) {
    %c0_i32 = arith.constant 0 : i32
    return %arg0, %arg1 : i32, i32
  }
}

module attributes {stable_mosaic.version = 11 : i64} {
  func.func @_gemm_single_kernel(%arg0: i32, %arg1: i32, %arg2: memref<8x576xbf16, #tpu.memory_space<vmem>>, %arg3: memref<576x128xbf16, #tpu.memory_space<vmem>>, %arg4: memref<1x128xf32, #tpu.memory_space<vmem>>, %arg5: memref<8x128xbf16, #tpu.memory_space<vmem>>) attributes {dimension_semantics = [#tpu.dimension_semantics<parallel>, #tpu.dimension_semantics<parallel>], iteration_bounds = array<i64: 1, 1>, scalar_prefetch = 0 : i64, scratch_operands = 0 : i64, tpu.core_type = #tpu.core_type<tc>, window_params = [{transform_indices = @transform_0, window_bounds = array<i64: 8, 576>}, {transform_indices = @transform_1, window_bounds = array<i64: 576, 128>}, {transform_indices = @transform_2, window_bounds = array<i64: 1, 128>}, {transform_indices = @transform_3, window_bounds = array<i64: 8, 128>}]} {
    %c0 = arith.constant 0 : index
    %c0_0 = arith.constant 0 : index
    %0 = vector.load %arg2[%c0, %c0_0] : memref<8x576xbf16, #tpu.memory_space<vmem>>, vector<8x576xbf16>
    %c0_1 = arith.constant 0 : index
    %c0_2 = arith.constant 0 : index
    %1 = vector.load %arg3[%c0_1, %c0_2] : memref<576x128xbf16, #tpu.memory_space<vmem>>, vector<576x128xbf16>
    %cst = arith.constant dense<0.000000e+00> : vector<8x128xf32>
    %2 = tpu.matmul %0, %1, %cst {dimension_numbers = #tpu.dot_dimension_numbers<[1], [0], [0], [1], [0, 0, 1, 1], [], []>} : vector<8x576xbf16>, vector<576x128xbf16>, vector<8x128xf32> -> vector<8x128xf32>
    %c0_3 = arith.constant 0 : index
    %c0_4 = arith.constant 0 : index
    %3 = vector.load %arg4[%c0_3, %c0_4] : memref<1x128xf32, #tpu.memory_space<vmem>>, vector<1x128xf32>
    %4 = vector.broadcast %3 : vector<1x128xf32> to vector<8x128xf32>
    %5 = arith.addf %2, %4 : vector<8x128xf32>
    %cst_5 = arith.constant 0.000000e+00 : f32
    %6 = vector.broadcast %cst_5 : f32 to vector<8x128xf32>
    %7 = arith.maximumf %5, %6 : vector<8x128xf32>
    %8 = arith.truncf %7 : vector<8x128xf32> to vector<8x128xbf16>
    %c0_6 = arith.constant 0 : index
    %c0_7 = arith.constant 0 : index
    %9 = vector.load %arg5[%c0_6, %c0_7] : memref<8x128xbf16, #tpu.memory_space<vmem>>, vector<8x128xbf16>
    tpu.vector_store %arg5[%c0_6, %c0_7], %8 {strides = array<i32>} : memref<8x128xbf16, #tpu.memory_space<vmem>>, vector<8x128xbf16>,
    return
  }
  func.func @transform_0(%arg0: i32, %arg1: i32) -> (i32, i32) {
    %c0_i32 = arith.constant 0 : i32
    %c0_i32_0 = arith.constant 0 : i32
    return %arg0, %c0_i32 : i32, i32
  }
  func.func @transform_1(%arg0: i32, %arg1: i32) -> (i32, i32) {
    %c0_i32 = arith.constant 0 : i32
    %c0_i32_0 = arith.constant 0 : i32
    return %c0_i32, %arg1 : i32, i32
  }
  func.func @transform_2(%arg0: i32, %arg1: i32) -> (i32, i32) {
    %c0_i32 = arith.constant 0 : i32
    %c0_i32_0 = arith.constant 0 : i32
    return %c0_i32, %arg1 : i32, i32
  }
  func.func @transform_3(%arg0: i32, %arg1: i32) -> (i32, i32) {
    %c0_i32 = arith.constant 0 : i32
    return %arg0, %arg1 : i32, i32
  }
}

module attributes {stable_mosaic.version = 11 : i64} {
  func.func @_gemm_single_kernel(%arg0: i32, %arg1: i32, %arg2: memref<32x288xbf16, #tpu.memory_space<vmem>>, %arg3: memref<288x128xbf16, #tpu.memory_space<vmem>>, %arg4: memref<1x128xf32, #tpu.memory_space<vmem>>, %arg5: memref<32x128xbf16, #tpu.memory_space<vmem>>) attributes {dimension_semantics = [#tpu.dimension_semantics<parallel>, #tpu.dimension_semantics<parallel>], iteration_bounds = array<i64: 1, 1>, scalar_prefetch = 0 : i64, scratch_operands = 0 : i64, tpu.core_type = #tpu.core_type<tc>, window_params = [{transform_indices = @transform_0, window_bounds = array<i64: 32, 288>}, {transform_indices = @transform_1, window_bounds = array<i64: 288, 128>}, {transform_indices = @transform_2, window_bounds = array<i64: 1, 128>}, {transform_indices = @transform_3, window_bounds = array<i64: 32, 128>}]} {
    %c0 = arith.constant 0 : index
    %c0_0 = arith.constant 0 : index
    %0 = vector.load %arg2[%c0, %c0_0] : memref<32x288xbf16, #tpu.memory_space<vmem>>, vector<32x288xbf16>
    %c0_1 = arith.constant 0 : index
    %c0_2 = arith.constant 0 : index
    %1 = vector.load %arg3[%c0_1, %c0_2] : memref<288x128xbf16, #tpu.memory_space<vmem>>, vector<288x128xbf16>
    %cst = arith.constant dense<0.000000e+00> : vector<32x128xf32>
    %2 = tpu.matmul %0, %1, %cst {dimension_numbers = #tpu.dot_dimension_numbers<[1], [0], [0], [1], [0, 0, 1, 1], [], []>} : vector<32x288xbf16>, vector<288x128xbf16>, vector<32x128xf32> -> vector<32x128xf32>
    %c0_3 = arith.constant 0 : index
    %c0_4 = arith.constant 0 : index
    %3 = vector.load %arg4[%c0_3, %c0_4] : memref<1x128xf32, #tpu.memory_space<vmem>>, vector<1x128xf32>
    %4 = vector.broadcast %3 : vector<1x128xf32> to vector<32x128xf32>
    %5 = arith.addf %2, %4 : vector<32x128xf32>
    %cst_5 = arith.constant 0.000000e+00 : f32
    %6 = vector.broadcast %cst_5 : f32 to vector<32x128xf32>
    %7 = arith.maximumf %5, %6 : vector<32x128xf32>
    %8 = arith.truncf %7 : vector<32x128xf32> to vector<32x128xbf16>
    %c0_6 = arith.constant 0 : index
    %c0_7 = arith.constant 0 : index
    %9 = vector.load %arg5[%c0_6, %c0_7] : memref<32x128xbf16, #tpu.memory_space<vmem>>, vector<32x128xbf16>
    tpu.vector_store %arg5[%c0_6, %c0_7], %8 {strides = array<i32>} : memref<32x128xbf16, #tpu.memory_space<vmem>>, vector<32x128xbf16>,
    return
  }
  func.func @transform_0(%arg0: i32, %arg1: i32) -> (i32, i32) {
    %c0_i32 = arith.constant 0 : i32
    %c0_i32_0 = arith.constant 0 : i32
    return %arg0, %c0_i32 : i32, i32
  }
  func.func @transform_1(%arg0: i32, %arg1: i32) -> (i32, i32) {
    %c0_i32 = arith.constant 0 : i32
    %c0_i32_0 = arith.constant 0 : i32
    return %c0_i32, %arg1 : i32, i32
  }
  func.func @transform_2(%arg0: i32, %arg1: i32) -> (i32, i32) {
    %c0_i32 = arith.constant 0 : i32
    %c0_i32_0 = arith.constant 0 : i32
    return %c0_i32, %arg1 : i32, i32
  }
  func.func @transform_3(%arg0: i32, %arg1: i32) -> (i32, i32) {
    %c0_i32 = arith.constant 0 : i32
    return %arg0, %arg1 : i32, i32
  }
}

module attributes {stable_mosaic.version = 11 : i64} {
  func.func @_gemm_single_kernel(%arg0: i32, %arg1: i32, %arg2: memref<128x144xbf16, #tpu.memory_space<vmem>>, %arg3: memref<144x128xbf16, #tpu.memory_space<vmem>>, %arg4: memref<1x128xf32, #tpu.memory_space<vmem>>, %arg5: memref<128x128xf32, #tpu.memory_space<vmem>>) attributes {dimension_semantics = [#tpu.dimension_semantics<parallel>, #tpu.dimension_semantics<parallel>], iteration_bounds = array<i64: 1, 1>, scalar_prefetch = 0 : i64, scratch_operands = 0 : i64, tpu.core_type = #tpu.core_type<tc>, window_params = [{transform_indices = @transform_0, window_bounds = array<i64: 128, 144>}, {transform_indices = @transform_1, window_bounds = array<i64: 144, 128>}, {transform_indices = @transform_2, window_bounds = array<i64: 1, 128>}, {transform_indices = @transform_3, window_bounds = array<i64: 128, 128>}]} {
    %c0 = arith.constant 0 : index
    %c0_0 = arith.constant 0 : index
    %0 = vector.load %arg2[%c0, %c0_0] : memref<128x144xbf16, #tpu.memory_space<vmem>>, vector<128x144xbf16>
    %c0_1 = arith.constant 0 : index
    %c0_2 = arith.constant 0 : index
    %1 = vector.load %arg3[%c0_1, %c0_2] : memref<144x128xbf16, #tpu.memory_space<vmem>>, vector<144x128xbf16>
    %cst = arith.constant dense<0.000000e+00> : vector<128x128xf32>
    %2 = tpu.matmul %0, %1, %cst {dimension_numbers = #tpu.dot_dimension_numbers<[1], [0], [0], [1], [0, 0, 1, 1], [], []>} : vector<128x144xbf16>, vector<144x128xbf16>, vector<128x128xf32> -> vector<128x128xf32>
    %c0_3 = arith.constant 0 : index
    %c0_4 = arith.constant 0 : index
    %3 = vector.load %arg4[%c0_3, %c0_4] : memref<1x128xf32, #tpu.memory_space<vmem>>, vector<1x128xf32>
    %4 = vector.broadcast %3 : vector<1x128xf32> to vector<128x128xf32>
    %5 = arith.addf %2, %4 : vector<128x128xf32>
    %cst_5 = arith.constant 0.000000e+00 : f32
    %6 = vector.broadcast %cst_5 : f32 to vector<128x128xf32>
    %7 = arith.subf %6, %5 : vector<128x128xf32>
    %8 = math.exp %7 : vector<128x128xf32>
    %cst_6 = arith.constant 1.000000e+00 : f32
    %9 = vector.broadcast %cst_6 : f32 to vector<128x128xf32>
    %10 = arith.addf %9, %8 : vector<128x128xf32>
    %11 = tpu.reciprocal %10 {approx = true} : vector<128x128xf32> -> vector<128x128xf32>
    %cst_7 = arith.constant 0.000000e+00 : f32
    %cst_8 = arith.constant 1.000000e+00 : f32
    %12 = vector.broadcast %cst_7 : f32 to vector<128x128xf32>
    %13 = arith.maximumf %12, %11 : vector<128x128xf32>
    %14 = vector.broadcast %cst_8 : f32 to vector<128x128xf32>
    %15 = arith.minimumf %14, %13 : vector<128x128xf32>
    %c0_9 = arith.constant 0 : index
    %c0_10 = arith.constant 0 : index
    %16 = vector.load %arg5[%c0_9, %c0_10] : memref<128x128xf32, #tpu.memory_space<vmem>>, vector<128x128xf32>
    tpu.vector_store %arg5[%c0_9, %c0_10], %15 {strides = array<i32>} : memref<128x128xf32, #tpu.memory_space<vmem>>, vector<128x128xf32>,
    return
  }
  func.func @transform_0(%arg0: i32, %arg1: i32) -> (i32, i32) {
    %c0_i32 = arith.constant 0 : i32
    %c0_i32_0 = arith.constant 0 : i32
    return %arg0, %c0_i32 : i32, i32
  }
  func.func @transform_1(%arg0: i32, %arg1: i32) -> (i32, i32) {
    %c0_i32 = arith.constant 0 : i32
    %c0_i32_0 = arith.constant 0 : i32
    return %c0_i32, %arg1 : i32, i32
  }
  func.func @transform_2(%arg0: i32, %arg1: i32) -> (i32, i32) {
    %c0_i32 = arith.constant 0 : i32
    %c0_i32_0 = arith.constant 0 : i32
    return %c0_i32, %arg1 : i32, i32
  }
  func.func @transform_3(%arg0: i32, %arg1: i32) -> (i32, i32) {
    %c0_i32 = arith.constant 0 : i32
    return %arg0, %arg1 : i32, i32
  }
}

</mosaic_0001>

<bundles_post_ra>
// kernel: unet_forward.10
= control target key start
LH: loop header
LB: loop body
LE: loop exit
PB: predicated region body
PF: predicated region fallthrough
CT: control target
= control target key end

     0   :  { %vm98_vm0 = vcmask 293888   ;;  %vm123_vm1 = vcmask 1041408   ;;  %s547_s1 = inlined_call_operand.vmem [shape: bf16[36,128], index: 1, kind: input, shape index: {}]   ;;  %s548_s0 = inlined_call_operand.vmem [shape: bf16[128,36], index: 0, kind: input, shape index: {}]   ;;  %s549_s2 = inlined_call_operand.vmem [shape: f32[1,128], index: 2, kind: input, shape index: {}]   ;;  %s550_s3 = inlined_call_operand.vmem [shape: bf16[128,128], index: 3, kind: output, shape index: {}]  }
   0x1   :  { %v448_v0 = vld [vmem:[%s547_s1] sm:$0xff]   ;;  %v449_v1 = vld [vmem:[%s547_s1 + $0x8] sm:$0xff]   ;;  %v450_v2 = vld [vmem:[%s547_s1 + $0x10] ss:$0 sps:$4 sm:$0x33]  }
   0x2   :  { %418 = vmatprep.subr.bf16.mxu0 %v448_v0  ;;  %440 = vmatprep.subr.bf16.mxu1 %v448_v0  ;;  %v451_v3 = vld [vmem:[%s548_s0] sm:$0xff]   ;;  %v125_v5 = vsel %vm123_vm1, %v450_v2, 0  ;;  %v453_v6 = vld [vmem:[%s548_s0 + $0x8] sm:$0xff]   ;;  %v455_v8 = vld [vmem:[%s548_s0 + $0x10] sm:$0xff]  }
   0x3   :  { %419 = vmatpush3.bf16.msra.mxu0 %v448_v0  ;;  %443 = vmatpush3.bf16.msra.mxu1 %v448_v0  ;;  %v452_v4 = vld [vmem:[%s548_s0 + $0x20] sm:$0xff]   ;;  %v454_v7 = vld [vmem:[%s548_s0 + $0x28] sm:$0xff]   ;;  %v456_v9 = vld [vmem:[%s548_s0 + $0x30] sm:$0xff]  }
   0x4   :  { %420 = vmatprep.subr.bf16.mxu0 %v449_v1  ;;  %441 = vmatprep.subr.bf16.mxu1 %v449_v1  ;;  %v457_v10 = vld [vmem:[%s548_s0 + $0x18] sm:$0xff]   ;;  %v308_v13 = vld [vmem:[%s549_s2] ss:$0 sm:$0xff] }
   0x5   :  { %424 = vmatprep.mubr.msk.bf16.mxu0 %vm98_vm0, %v451_v3  ;;  %432 = vmatprep.mubr.msk.bf16.mxu1 %vm98_vm0, %v452_v4  ;;  %v458_v11 = vld [vmem:[%s548_s0 + $0x38] sm:$0xff]  }
   0x7   :  { %421 = vmatpush3.bf16.msra.mxu0 %v449_v1  ;;  %444 = vmatpush3.bf16.msra.mxu1 %v449_v1 }
   0x8   :  { %446 = vmatprep.subr.msk.bf16.mxu0 %vm123_vm1, %v450_v2  ;;  %447 = vmatprep.subr.msk.bf16.mxu1 %vm123_vm1, %v450_v2 }
   0xb   :  { %423 = vmatpush3.bf16.msra.mxu0 %v125_v5  ;;  %445 = vmatpush3.bf16.msra.mxu1 %v125_v5 }
   0xe   :  { %425 = vmatmul.mubr.msk.bf16.vlgmr.msra.gmra.mrb[0].mxu0 %vm98_vm0, %v453_v6  ;;  %433 = vmatmul.mubr.msk.bf16.vlgmr.msra.gmra.mrb[0].mxu1 %vm98_vm0, %v454_v7 }
   0xf   :  { %428 = vmatprep.mubr.msk.bf16.mxu0 %vm98_vm0, %v455_v8  ;;  %436 = vmatprep.mubr.msk.bf16.mxu1 %vm98_vm0, %v456_v9 }
  0x16   :  { %429 = vmatmul.mubr.msk.bf16.gmra.mrb[4].mxu0 %vm98_vm0, %v457_v10  ;;  %437 = vmatmul.mubr.msk.bf16.gmra.mrb[4].mxu1 %vm98_vm0, %v458_v11 }
  0xe1   :  { %v426_v12 = vpop.f32.mrb[0].mxu0  ;;  %v434_v14 = vpop.f32.mrb[0].mxu1 }
  0xe2   :  { %v161_v15 = vpop.f32.mrb[1].mxu0  ;;  %v193_v16 = vpop.f32.mrb[1].mxu1  ;;  %v170_v19 = vadd.f32 %v426_v12, %v308_v13  ;;  %v202_v20 = vadd.f32 %v434_v14, %v308_v13 }
  0xe3   :  { %v427_v17 = vpop.f32.mrb[2].mxu0  ;;  %v435_v18 = vpop.f32.mrb[2].mxu1  ;;  %v162_v25 = vadd.f32 %v308_v13, %v161_v15  ;;  %v194_v26 = vadd.f32 %v308_v13, %v193_v16 }
  0xe4   :  { %v173_v21 = vadd.f32 %v427_v17, %v308_v13  ;;  %v205_v22 = vadd.f32 %v435_v18, %v308_v13  ;;  %v164_v23 = vpop.f32.mrb[3].mxu0  ;;  %v196_v24 = vpop.f32.mrb[3].mxu1 }
  0xe5   :  { %v165_v27 = vadd.f32 %v308_v13, %v164_v23  ;;  %v197_v28 = vadd.f32 %v308_v13, %v196_v24 }
  0xe6   :  { %v368_v29 = vpack.c.bf16 %v173_v21, %v170_v19  ;;  %v388_v30 = vpack.c.bf16 %v205_v22, %v202_v20 }
  0xe7   :  { %v363_v31 = vpack.c.bf16 %v165_v27, %v162_v25  ;;  %v383_v32 = vpack.c.bf16 %v197_v28, %v194_v26 }
  0xe8   :  { %400 = vst [vmem:[%s550_s3 + $0x8] sm:$0xff] %v368_v29   ;;  %404 = vst [vmem:[%s550_s3 + $0x28] sm:$0xff] %v388_v30  }
  0xe9   :  { %364 = vst [vmem:[%s550_s3] sm:$0xff] %v363_v31   ;;  %403 = vst [vmem:[%s550_s3 + $0x20] sm:$0xff] %v383_v32   ;;  %v430_v33 = vpop.f32.mrb[4].mxu0  ;;  %v438_v34 = vpop.f32.mrb[4].mxu1 }
  0xea   :  { %v177_v35 = vpop.f32.mrb[5].mxu0  ;;  %v209_v36 = vpop.f32.mrb[5].mxu1  ;;  %v186_v39 = vadd.f32 %v430_v33, %v308_v13  ;;  %v218_v40 = vadd.f32 %v438_v34, %v308_v13 }
  0xeb   :  { %v431_v37 = vpop.f32.mrb[6].mxu0  ;;  %v439_v38 = vpop.f32.mrb[6].mxu1  ;;  %v178_v45 = vadd.f32 %v308_v13, %v177_v35  ;;  %v210_v46 = vadd.f32 %v308_v13, %v209_v36 }
  0xec   :  { %v189_v41 = vadd.f32 %v431_v37, %v308_v13  ;;  %v221_v42 = vadd.f32 %v439_v38, %v308_v13  ;;  %v180_v43 = vpop.f32.mrb[7].mxu0  ;;  %v212_v44 = vpop.f32.mrb[7].mxu1 }
  0xed   :  { %v181_v47 = vadd.f32 %v308_v13, %v180_v43  ;;  %v213_v48 = vadd.f32 %v308_v13, %v212_v44 }
  0xee   :  { %v378_v49 = vpack.c.bf16 %v189_v41, %v186_v39  ;;  %v398_v50 = vpack.c.bf16 %v221_v42, %v218_v40 }
  0xef   :  { %v373_v51 = vpack.c.bf16 %v181_v47, %v178_v45  ;;  %v393_v52 = vpack.c.bf16 %v213_v48, %v210_v46 }
  0xf0   :  { %402 = vst [vmem:[%s550_s3 + $0x18] sm:$0xff] %v378_v49   ;;  %406 = vst [vmem:[%s550_s3 + $0x38] sm:$0xff] %v398_v50  }
  0xf1   :  { %401 = vst [vmem:[%s550_s3 + $0x10] sm:$0xff] %v373_v51   ;;  %405 = vst [vmem:[%s550_s3 + $0x30] sm:$0xff] %v393_v52  }

// kernel: unet_forward.11
= control target key start
LH: loop header
LB: loop body
LE: loop exit
PB: predicated region body
PF: predicated region fallthrough
CT: control target
= control target key end

     0   :  { %vm72_vm0 = vcmask 588800   ;;  %vm79_vm1 = vcmask 1043456   ;;  %s264_s1 = inlined_call_operand.vmem [shape: bf16[72,128], index: 1, kind: input, shape index: {}]   ;;  %s265_s0 = inlined_call_operand.vmem [shape: bf16[32,72], index: 0, kind: input, shape index: {}]   ;;  %s266_s2 = inlined_call_operand.vmem [shape: f32[1,128], index: 2, kind: input, shape index: {}]   ;;  %s267_s3 = inlined_call_operand.vmem [shape: bf16[32,128], index: 3, kind: output, shape index: {}]  }
   0x1   :  { %v207_v0 = vld [vmem:[%s264_s1] sm:$0xff]   ;;  %v208_v1 = vld [vmem:[%s264_s1 + $0x8] sm:$0xff]   ;;  %v209_v2 = vld [vmem:[%s264_s1 + $0x10] sm:$0xff]  }
   0x2   :  { %192 = vmatprep.subr.bf16.mxu0 %v207_v0  ;;  %v212_v3 = vld [vmem:[%s265_s0] sm:$0xff]   ;;  %v210_v4 = vld [vmem:[%s264_s1 + $0x18] sm:$0xff]   ;;  %v213_v7 = vld [vmem:[%s265_s0 + $0x8] sm:$0xff]  }
   0x3   :  { %193 = vmatpush3.bf16.msra.mxu0 %v207_v0  ;;  %202 = vmatprep.mubr.msk.bf16.mxu0 %vm72_vm0, %v212_v3  ;;  %v211_v5 = vld [vmem:[%s264_s1 + $0x20] ss:$0 sps:$4 sm:$0xff]  }
   0x4   :  { %194 = vmatprep.subr.bf16.mxu0 %v208_v1  ;;  %v81_v6 = vsel %vm79_vm1, %v211_v5, 0  ;;  %v156_v9 = vld [vmem:[%s266_s2] ss:$0 sm:$0xff] }
   0x7   :  { %195 = vmatpush3.bf16.msra.mxu0 %v208_v1 }
   0x8   :  { %196 = vmatprep.subr.bf16.mxu0 %v209_v2 }
   0xb   :  { %197 = vmatpush3.bf16.msra.mxu0 %v209_v2 }
   0xc   :  { %198 = vmatprep.subr.bf16.mxu0 %v210_v4 }
   0xf   :  { %199 = vmatpush3.bf16.msra.mxu0 %v210_v4 }
  0x10   :  { %206 = vmatprep.subr.msk.bf16.mxu0 %vm79_vm1, %v211_v5 }
  0x13   :  { %201 = vmatpush3.bf16.msra.mxu0 %v81_v6 }
  0x16   :  { %203 = vmatmul.mubr.msk.bf16.vlgmr.msra.gmra.mrb[0].mxu0 %vm72_vm0, %v213_v7 }
  0xe9   :  { %v204_v8 = vpop.f32.mrb[0].mxu0 }
  0xea   :  { %v117_v10 = vpop.f32.mrb[1].mxu0  ;;  %v126_v12 = vadd.f32 %v204_v8, %v156_v9 }
  0xeb   :  { %v205_v11 = vpop.f32.mrb[2].mxu0  ;;  %v118_v15 = vadd.f32 %v156_v9, %v117_v10 }
  0xec   :  { %v129_v13 = vadd.f32 %v205_v11, %v156_v9  ;;  %v120_v14 = vpop.f32.mrb[3].mxu0 }
  0xed   :  { %v121_v16 = vadd.f32 %v156_v9, %v120_v14 }
  0xee   :  { %v182_v17 = vpack.c.bf16 %v129_v13, %v126_v12 }
  0xef   :  { %v177_v18 = vpack.c.bf16 %v121_v16, %v118_v15 }
  0xf0   :  { %184 = vst [vmem:[%s267_s3 + $0x8] sm:$0xff] %v182_v17  }
  0xf1   :  { %178 = vst [vmem:[%s267_s3] sm:$0xff] %v177_v18  }

// kernel: unet_forward.12
= control target key start
LH: loop header
LB: loop body
LE: loop exit
PB: predicated region body
PF: predicated region fallthrough
CT: control target
= control target key end

     0   :  { %v176_v0 = vmov 0   ;;  %vm101_vm0 = vcmask 130048   ;;  %s233_s1 = inlined_call_operand.vmem [shape: bf16[144,128], index: 1, kind: input, shape index: {}]   ;;  %s234_s0 = inlined_call_operand.vmem [shape: bf16[8,144], index: 0, kind: input, shape index: {}]   ;;  %s235_s2 = inlined_call_operand.vmem [shape: f32[1,128], index: 2, kind: input, shape index: {}]   ;;  %s236_s3 = inlined_call_operand.vmem [shape: bf16[8,128], index: 3, kind: output, shape index: {}]  }
   0x1   :  { %105 = vmatprep.subr.bf16.mxu0 %v176_v0  ;;  %v165_v1 = vld [vmem:[%s233_s1] sm:$0xff]   ;;  %v166_v2 = vld [vmem:[%s233_s1 + $0x8] sm:$0xff]   ;;  %v167_v3 = vld [vmem:[%s233_s1 + $0x10] sm:$0xff]  }
   0x2   :  { %106 = vmatpush1.bf16.msra.mxu0 %v165_v1  ;;  %v15_v4 = vld [vmem:[%s234_s0] sm:$0xff]  ;;  %v168_v5 = vld [vmem:[%s233_s1 + $0x18] sm:$0xff]   ;;  %v170_v8 = vld [vmem:[%s233_s1 + $0x28] sm:$0xff]  }
   0x3   :  { %107 = vmatprep.subr.bf16.mxu0 %v176_v0  ;;  %v153_v6 = vcombine.high %v15_v4, %v15_v4  ;;  %v169_v7 = vld [vmem:[%s233_s1 + $0x20] sm:$0xff]   ;;  %v171_v9 = vld [vmem:[%s233_s1 + $0x30] sm:$0xff]   ;;  %v172_v10 = vld [vmem:[%s233_s1 + $0x38] sm:$0xff]   ;;  %v152_v12 = vcombine.low %v15_v4, %v15_v4 }
   0x4   :  { %v173_v11 = vld [vmem:[%s233_s1 + $0x40] sm:$0xff]  }
   0x5   :  { %163 = vmatprep.mubr.msk.bf16.mxu0 %vm101_vm0, %v153_v6  ;;  %v151_v13 = vld [vmem:[%s235_s2] ss:$0 sm:$0xff] }
   0x6   :  { %108 = vmatpush1.bf16.msra.mxu0 %v166_v2 }
   0x7   :  { %109 = vmatprep.subr.bf16.mxu0 %v176_v0 }
   0xa   :  { %110 = vmatpush1.bf16.msra.mxu0 %v167_v3 }
   0xb   :  { %111 = vmatprep.subr.bf16.mxu0 %v176_v0 }
   0xe   :  { %112 = vmatpush1.bf16.msra.mxu0 %v168_v5 }
   0xf   :  { %113 = vmatprep.subr.bf16.mxu0 %v176_v0 }
  0x12   :  { %114 = vmatpush1.bf16.msra.mxu0 %v169_v7 }
  0x13   :  { %115 = vmatprep.subr.bf16.mxu0 %v176_v0 }
  0x16   :  { %116 = vmatpush1.bf16.msra.mxu0 %v170_v8 }
  0x17   :  { %117 = vmatprep.subr.bf16.mxu0 %v176_v0 }
  0x1a   :  { %118 = vmatpush1.bf16.msra.mxu0 %v171_v9 }
  0x1b   :  { %119 = vmatprep.subr.bf16.mxu0 %v176_v0 }
  0x1e   :  { %120 = vmatpush1.bf16.msra.mxu0 %v172_v10 }
  0x1f   :  { %121 = vmatprep.subr.bf16.mxu0 %v176_v0 }
  0x22   :  { %122 = vmatpush1.bf16.msra.mxu0 %v173_v11 }
  0x25   :  { %138 = vmatmul.mubr.bf16.vlgmr.msra.gmra.mrb[0].mxu0 %v152_v12 }
  0xf8   :  { %v139_v14 = vpop.f32.mrb[0].mxu0 }
  0xf9   :  { %v140_v15 = vadd.f32 %v151_v13, %v139_v14  ;;  %v141_v16 = vpop.f32.mrb[1].mxu0 }
  0xfa   :  { %v142_v17 = vpop.f32.mrb[2].mxu0 }
  0xfb   :  { %v145_v18 = vpack.c.bf16 %v140_v15, %v140_v15  ;;  %v143_v19 = vpop.f32.mrb[3].mxu0 }
  0xfd   :  { %146 = vst [vmem:[%s236_s3] sm:$0xf] %v145_v18 }

// kernel: unet_forward.18
= control target key start
LH: loop header
LB: loop body
LE: loop exit
PB: predicated region body
PF: predicated region fallthrough
CT: control target
= control target key end

     0   :  { %v177_v1 = vmov 0.0   ;;  %vm178_vm0 = vmmov 0   ;;  %vm61_vm2 = vcmask 523264   ;;  %s225_s0 = inlined_call_operand.vmem [shape: bf16[2,1,1,9,128], index: 0, kind: input, shape index: {}, may-alias: {0,4}]   ;;  %s226_s1 = inlined_call_operand.vmem [shape: bf16[2,64], index: 1, kind: input, shape index: {}]   ;;  %s227_s2 = inlined_call_operand.vmem [shape: bf16[64,128], index: 2, kind: input, shape index: {}]   ;;  %s228_s3 = inlined_call_operand.vmem [shape: f32[1,128], index: 3, kind: input, shape index: {}]   ;;  %s229_s4 = inlined_call_operand.vmem [shape: bf16[2,1,1,9,128], index: 4, kind: output, shape index: {}, may-alias: {0,4}]  }
   0x1   :  { %v173_v0 = vld [vmem:[%s227_s2] sm:$0xff]   ;;  %159 = vmatprep.subr.bf16.mxu0 %v177_v1  ;;  %v174_v2 = vld [vmem:[%s227_s2 + $0x8] sm:$0xff]   ;;  %167 = vmatprep.mubr.msk.bf16.mxu0 %vm178_vm0, %v177_v1  ;;  %v175_v3 = vld [vmem:[%s227_s2 + $0x10] sm:$0xff]  }
   0x2   :  { %160 = vmatpush3.bf16.msra.mxu0 %v173_v0  ;;  %v18_v4 = vld [vmem:[%s226_s1] sm:$0x1]  ;;  %v176_v5 = vld [vmem:[%s227_s2 + $0x18] sm:$0xff]  }
   0x3   :  { %161 = vmatprep.subr.bf16.mxu0 %v177_v1  ;;  %v20_v6 = vmul.bf16 1045249613, %v18_v4  ;;  %vm19_vm1 = vcmp.gt.bf16.partialorder %v18_v4, 0  ;;  %v147_v8 = vld [vmem:[%s228_s3] ss:$0 sm:$0xff] }
   0x5   :  { %v21_v7 = vsel %vm19_vm1, %v18_v4, %v20_v6 }
   0x6   :  { %162 = vmatpush3.bf16.msra.mxu0 %v174_v2 }
   0x7   :  { %163 = vmatprep.subr.bf16.mxu0 %v177_v1 }
   0xa   :  { %164 = vmatpush3.bf16.msra.mxu0 %v175_v3 }
   0xb   :  { %165 = vmatprep.subr.bf16.mxu0 %v177_v1 }
   0xe   :  { %166 = vmatpush3.bf16.msra.mxu0 %v176_v5 }
  0x11   :  { %168 = vmatmul.mubr.msk.bf16.vlgmr.msra.gmra.mrb[0].mxu0 %vm61_vm2, %v21_v7 }
  0xe4   :  { %v99_v9 = vpop.f32.mrb[0].mxu0 }
  0xe5   :  { %v100_v10 = vadd.f32 %v147_v8, %v99_v9  ;;  %v169_v11 = vpop.f32.mrb[1].mxu0 }
  0xe6   :  { %v102_v12 = vpop.f32.mrb[2].mxu0 }
  0xe7   :  { %v105_v13 = vmax.f32 %v100_v10, 0.0  ;;  %v170_v14 = vpop.f32.mrb[3].mxu0 }
  0xe9   :  { %v106_v15 = vpack.c.bf16 %v105_v13, %v105_v13 }
  0xeb   :  { %107 = vst [vmem:[#allocation2] sm:$0x1] %v106_v15 }
  0xf2   :  { %v125_v16 = vld [vmem:[#allocation2] sm:$0x1] }
  0xf3   :  { %153 = vst [vmem:[%s229_s4 + $0x4] sm:$0x1] %v125_v16 }

// kernel: unet_forward.13
= control target key start
LH: loop header
LB: loop body
LE: loop exit
PB: predicated region body
PF: predicated region fallthrough
CT: control target
= control target key end

     0   :  { %v358_v1 = vmov 0.0   ;;  %vm359_vm0 = vmmov 0   ;;  %v360_v6 = vmov 1966171168   ;;  %v71_v8 = vlaneseq  ;;  %s444_s1 = inlined_call_operand.vmem [shape: bf16[288,128], index: 1, kind: input, shape index: {}]   ;;  %s445_s0 = inlined_call_operand.vmem [shape: bf16[2,288], index: 0, kind: input, shape index: {}]   ;;  %s446_s2 = inlined_call_operand.vmem [shape: f32[1,128], index: 2, kind: input, shape index: {}]   ;;  %s447_s3 = inlined_call_operand.vmem [shape: bf16[2,128], index: 3, kind: output, shape index: {}]  }
   0x1   :  { %v340_v0 = vld [vmem:[%s444_s1 + $0x40] sm:$0xff]   ;;  %329 = vmatprep.subr.bf16.mxu1 %v358_v1  ;;  %333 = vmatprep.mubr.msk.bf16.mxu1 %vm359_vm0, %v358_v1  ;;  %v342_v3 = vld [vmem:[%s444_s1 + $0x48] sm:$0xff]   ;;  %v344_v5 = vld [vmem:[%s444_s1 + $0x50] sm:$0xff]   ;;  %v69_v7 = vunpack.c.l.s4 %v360_v6  ;;  %vm193_vm1 = vcmask 261120  }
   0x2   :  { %v341_v2 = vld [vmem:[%s444_s1] sm:$0xff]   ;;  %304 = vmatprep.subr.bf16.mxu0 %v340_v0  ;;  %v343_v4 = vld [vmem:[%s444_s1 + $0x8] sm:$0xff]   ;;  %v345_v9 = vld [vmem:[%s444_s1 + $0x10] sm:$0xff]   ;;  %v72_v12 = vshrl.u32 %v71_v8, 7 }
   0x3   :  { %305 = vmatpush3.bf16.msra.mxu0 %v341_v2  ;;  %v346_v10 = vld [vmem:[%s444_s1 + $0x58] sm:$0xff]   ;;  %v70_v11 = vunpack.c.0.s8 %v69_v7  ;;  %v348_v14 = vld [vmem:[%s444_s1 + $0x60] sm:$0xff]   ;;  %v350_v18 = vld [vmem:[%s444_s1 + $0x68] sm:$0xff]  }
   0x4   :  { %306 = vmatprep.subr.bf16.mxu0 %v342_v3  ;;  %v347_v13 = vld [vmem:[%s444_s1 + $0x18] sm:$0xff]   ;;  %v354_v15 = vld [vmem:[%s444_s1 + $0x80] sm:$0xff]   ;;  %v357_v21 = vld [vmem:[%s444_s1 + $0x88] sm:$0xff]  }
   0x5   :  { %v73_v16 = vsub.s32 %v70_v11, %v72_v12  ;;  %v349_v17 = vld [vmem:[%s444_s1 + $0x20] sm:$0xff]   ;;  %330 = vmatpush3.bf16.msra.mxu1 %v354_v15  ;;  %v351_v23 = vld [vmem:[%s444_s1 + $0x28] sm:$0xff]   ;;  %v352_v24 = vld [vmem:[%s444_s1 + $0x70] sm:$0xff]  }
   0x6   :  { %331 = vmatprep.subr.bf16.mxu1 %v358_v1  ;;  %v284_v19 = vld.sshfl [vmem:[%s445_s0] sm:$0x13 pattern:$0x75316420]  ;;  %v353_v27 = vld [vmem:[%s444_s1 + $0x30] sm:$0xff]   ;;  %v355_v28 = vld [vmem:[%s444_s1 + $0x78] sm:$0xff]  }
   0x7   :  { %307 = vmatpush3.bf16.msra.mxu0 %v343_v4  ;;  %v67_v20 = vcombine.high %v284_v19, %v284_v19  ;;  %v74_v22 = vrot.slane %v284_v19, %v73_v16  ;;  %v356_v29 = vld [vmem:[%s444_s1 + $0x38] sm:$0xff]   ;;  %v283_v36 = vld [vmem:[%s446_s2] ss:$0 sm:$0xff] }
   0x8   :  { %308 = vmatprep.subr.bf16.mxu0 %v344_v5 }
   0x9   :  { %v81_v25 = vrot.slane %v67_v20, %v73_v16  ;;  %332 = vmatpush3.bf16.msra.mxu1 %v357_v21  ;;  %v82_v26 = vcombine.high %v74_v22, %v74_v22 }
   0xb   :  { %309 = vmatpush3.bf16.msra.mxu0 %v345_v9  ;;  %229 = vmatprep.mubr.bf16.mxu0 %v81_v25 }
   0xc   :  { %310 = vmatprep.subr.bf16.mxu0 %v346_v10  ;;  %334 = vmatmul.mubr.msk.bf16.vlgmr.msra.gmra.mrb[0].mxu1 %vm193_vm1, %v82_v26 }
   0xf   :  { %311 = vmatpush3.bf16.msra.mxu0 %v347_v13 }
  0x10   :  { %312 = vmatprep.subr.bf16.mxu0 %v348_v14 }
  0x13   :  { %313 = vmatpush3.bf16.msra.mxu0 %v349_v17 }
  0x14   :  { %314 = vmatprep.subr.bf16.mxu0 %v350_v18 }
  0x17   :  { %315 = vmatpush3.bf16.msra.mxu0 %v351_v23 }
  0x18   :  { %316 = vmatprep.subr.bf16.mxu0 %v352_v24 }
  0x1b   :  { %317 = vmatpush3.bf16.msra.mxu0 %v353_v27 }
  0x1c   :  { %318 = vmatprep.subr.bf16.mxu0 %v355_v28 }
  0x1f   :  { %319 = vmatpush3.bf16.msra.mxu0 %v356_v29 }
  0x22   :  { %230 = vmatmul.mubr.bf16.vlgmr.msra.gmra.mrb[0].mxu0 %v74_v22 }
  0xdf   :  { %v271_v30 = vpop.f32.mrb[0].mxu1 }
  0xe0   :  { %v335_v31 = vpop.f32.mrb[1].mxu1 }
  0xe1   :  { %v274_v32 = vpop.f32.mrb[2].mxu1 }
  0xe2   :  { %v336_v33 = vpop.f32.mrb[3].mxu1 }
  0xf5   :  { %v320_v34 = vpop.f32.mrb[0].mxu0 }
  0xf6   :  { %v321_v35 = vpop.f32.mrb[1].mxu0 }
  0xf7   :  { %v322_v37 = vadd.f32 %v321_v35, %v320_v34  ;;  %v323_v38 = vpop.f32.mrb[2].mxu0 }
  0xf8   :  { %v324_v39 = vpop.f32.mrb[3].mxu0 }
  0xf9   :  { %v232_v40 = vadd.f32 %v322_v37, %v283_v36 }
  0xfb   :  { %v272_v41 = vadd.f32 %v271_v30, %v232_v40 }
  0xfd   :  { %v277_v42 = vpack.c.bf16 %v272_v41, %v272_v41 }
  0xff   :  { %278 = vst [vmem:[%s447_s3] sm:$0x1] %v277_v42 }

// kernel: unet_forward.14
= control target key start
LH: loop header
LB: loop body
LE: loop exit
PB: predicated region body
PF: predicated region fallthrough
CT: control target
= control target key end

     0   :  { %v1148_v21 = vmov 1966171168   ;;  %v174_v23 = vlaneseq  ;;  %vm1150_vm0 = vmmov 0   ;;  %s1413_s1 = inlined_call_operand.vmem [shape: bf16[1152,128], index: 1, kind: input, shape index: {}]   ;;  %s1414_s0 = inlined_call_operand.vmem [shape: bf16[2,1152], index: 0, kind: input, shape index: {}]   ;;  %s1415_s2 = inlined_call_operand.vmem [shape: f32[1,128], index: 2, kind: input, shape index: {}]   ;;  %s1416_s3 = inlined_call_operand.vmem [shape: bf16[2,128], index: 3, kind: output, shape index: {}]  }
   0x1   :  { %v1075_v0 = vld [vmem:[%s1413_s1 + $0x40] sm:$0xff]   ;;  %v1079_v4 = vld [vmem:[%s1413_s1 + $0x48] sm:$0xff]   ;;  %v1083_v8 = vld [vmem:[%s1413_s1 + $0x50] sm:$0xff]   ;;  %v172_v22 = vunpack.c.l.s4 %v1148_v21 }
   0x2   :  { %v1076_v1 = vld [vmem:[%s1413_s1] sm:$0xff]   ;;  %955 = vmatprep.subr.bf16.mxu0 %v1075_v0  ;;  %v1080_v5 = vld [vmem:[%s1413_s1 + $0x8] sm:$0xff]   ;;  %v1084_v9 = vld [vmem:[%s1413_s1 + $0x10] sm:$0xff]   ;;  %v175_v29 = vshrl.u32 %v174_v23, 7 }
   0x3   :  { %v1077_v2 = vld [vmem:[%s1413_s1 + $0xc0] sm:$0xff]   ;;  %956 = vmatpush3.bf16.msra.mxu0 %v1076_v1  ;;  %v1081_v6 = vld [vmem:[%s1413_s1 + $0xc8] sm:$0xff]   ;;  %v1085_v10 = vld [vmem:[%s1413_s1 + $0xd0] sm:$0xff]   ;;  %v173_v28 = vunpack.c.0.s8 %v172_v22 }
   0x4   :  { %v1078_v3 = vld [vmem:[%s1413_s1 + $0x80] sm:$0xff]   ;;  %977 = vmatprep.subr.bf16.mxu1 %v1077_v2  ;;  %957 = vmatprep.subr.bf16.mxu0 %v1079_v4  ;;  %v1082_v7 = vld [vmem:[%s1413_s1 + $0x88] sm:$0xff]   ;;  %v1086_v11 = vld [vmem:[%s1413_s1 + $0x90] sm:$0xff]  }
   0x5   :  { %978 = vmatpush3.bf16.msra.mxu1 %v1078_v3  ;;  %v1087_v12 = vld [vmem:[%s1413_s1 + $0x58] sm:$0xff]   ;;  %v1091_v16 = vld [vmem:[%s1413_s1 + $0x60] sm:$0xff]   ;;  %v1095_v20 = vld [vmem:[%s1413_s1 + $0x68] sm:$0xff]   ;;  %v1258_v34 = vsub.s32 %v173_v28, %v175_v29 }
   0x6   :  { %979 = vmatprep.subr.bf16.mxu1 %v1081_v6  ;;  %v1088_v13 = vld [vmem:[%s1413_s1 + $0x18] sm:$0xff]   ;;  %v1092_v17 = vld [vmem:[%s1413_s1 + $0x20] sm:$0xff]   ;;  %v1096_v24 = vld [vmem:[%s1413_s1 + $0x28] sm:$0xff]  }
   0x7   :  { %958 = vmatpush3.bf16.msra.mxu0 %v1080_v5  ;;  %v1089_v14 = vld [vmem:[%s1413_s1 + $0xd8] sm:$0xff]   ;;  %v1093_v18 = vld [vmem:[%s1413_s1 + $0xe0] sm:$0xff]   ;;  %v1097_v25 = vld [vmem:[%s1413_s1 + $0xe8] sm:$0xff]  }
   0x8   :  { %959 = vmatprep.subr.bf16.mxu0 %v1083_v8  ;;  %v1090_v15 = vld [vmem:[%s1413_s1 + $0x98] sm:$0xff]   ;;  %v1094_v19 = vld [vmem:[%s1413_s1 + $0xa0] sm:$0xff]   ;;  %v1098_v26 = vld [vmem:[%s1413_s1 + $0xa8] sm:$0xff]  }
   0x9   :  { %980 = vmatpush3.bf16.msra.mxu1 %v1082_v7  ;;  %v1099_v27 = vld [vmem:[%s1413_s1 + $0x70] sm:$0xff]   ;;  %v1103_v33 = vld [vmem:[%s1413_s1 + $0x78] sm:$0xff]   ;;  %v15_v37 = vld [vmem:[%s1414_s0] sm:$0xff] }
   0xa   :  { %981 = vmatprep.subr.bf16.mxu1 %v1085_v10  ;;  %v1100_v30 = vld [vmem:[%s1413_s1 + $0x30] sm:$0xff]   ;;  %v1104_v35 = vld [vmem:[%s1413_s1 + $0x38] sm:$0xff]   ;;  %v170_v38 = vcombine.high %v15_v37, %v15_v37  ;;  %v177_v39 = vrot.slane %v15_v37, %v1258_v34  ;;  %v1108_v41 = vld [vmem:[%s1413_s1 + $0x140] sm:$0xff]  }
   0xb   :  { %960 = vmatpush3.bf16.msra.mxu0 %v1084_v9  ;;  %v1101_v31 = vld [vmem:[%s1413_s1 + $0xf0] sm:$0xff]   ;;  %v1105_v36 = vld [vmem:[%s1413_s1 + $0xf8] sm:$0xff]   ;;  %v1110_v45 = vld [vmem:[%s1413_s1 + $0x1c0] sm:$0xff]  }
   0xc   :  { %961 = vmatprep.subr.bf16.mxu0 %v1087_v12  ;;  %v1102_v32 = vld [vmem:[%s1413_s1 + $0xb0] sm:$0xff]   ;;  %v1107_v40 = vld [vmem:[%s1413_s1 + $0xb8] sm:$0xff]   ;;  %v185_v42 = vcombine.high %v177_v39, %v177_v39  ;;  %v193_v43 = vrot.slane %v177_v39, %v1258_v34  ;;  %v1278_v44 = vrot.slane %v170_v38, %v1258_v34  ;;  %v1109_v47 = vld [vmem:[%s1413_s1 + $0x100] sm:$0xff]  }
   0xd   :  { %982 = vmatpush3.bf16.msra.mxu1 %v1086_v11  ;;  %v1112_v50 = vld [vmem:[%s1413_s1 + $0x148] sm:$0xff]   ;;  %v1111_v52 = vld [vmem:[%s1413_s1 + $0x180] sm:$0xff]   ;;  %v1116_v57 = vld [vmem:[%s1413_s1 + $0x150] sm:$0xff]  }
   0xe   :  { %983 = vmatprep.subr.bf16.mxu1 %v1089_v14  ;;  %v207_v46 = vrot.slane %v185_v42, %v1258_v34  ;;  %v186_v48 = vcombine.high %v1278_v44, %v1278_v44  ;;  %v215_v49 = vcombine.high %v193_v43, %v193_v43  ;;  %v1114_v54 = vld [vmem:[%s1413_s1 + $0x1c8] sm:$0xff]   ;;  %v1118_v59 = vld [vmem:[%s1413_s1 + $0x1d0] sm:$0xff]   ;;  %v1120_v61 = vld [vmem:[%s1413_s1 + $0x158] sm:$0xff]  }
   0xf   :  { %962 = vmatpush3.bf16.msra.mxu0 %v1088_v13  ;;  %v1113_v55 = vld [vmem:[%s1413_s1 + $0x108] sm:$0xff]   ;;  %v1117_v60 = vld [vmem:[%s1413_s1 + $0x110] sm:$0xff]   ;;  %v1122_v63 = vld [vmem:[%s1413_s1 + $0x1d8] sm:$0xff]  }
  0x10   :  { %963 = vmatprep.subr.bf16.mxu0 %v1091_v16  ;;  %706 = vmatprep.mubr.bf16.mxu0 %v207_v46  ;;  %v217_v51 = vcombine.high %v207_v46, %v207_v46  ;;  %v214_v53 = vrot.slane %v186_v48, %v1258_v34  ;;  %v1115_v58 = vld [vmem:[%s1413_s1 + $0x188] sm:$0xff]   ;;  %v1119_v62 = vld [vmem:[%s1413_s1 + $0x190] sm:$0xff]   ;;  %v1121_v0 = vld [vmem:[%s1413_s1 + $0x118] sm:$0xff]  }
  0x11   :  { %984 = vmatpush3.bf16.msra.mxu1 %v1090_v15  ;;  %v1124_v1 = vld [vmem:[%s1413_s1 + $0x160] sm:$0xff]   ;;  %v1123_v2 = vld [vmem:[%s1413_s1 + $0x198] sm:$0xff]   ;;  %v1128_v5 = vld [vmem:[%s1413_s1 + $0x168] sm:$0xff]  }
  0x12   :  { %985 = vmatprep.subr.bf16.mxu1 %v1093_v18  ;;  %746 = vmatprep.mubr.bf16.mxu1 %v217_v51  ;;  %v218_v56 = vcombine.high %v214_v53, %v214_v53  ;;  %v1126_v3 = vld [vmem:[%s1413_s1 + $0x1e0] sm:$0xff]   ;;  %v1130_v7 = vld [vmem:[%s1413_s1 + $0x1e8] sm:$0xff]   ;;  %v1132_v9 = vld [vmem:[%s1413_s1 + $0x170] sm:$0xff]  }
  0x13   :  { %964 = vmatpush3.bf16.msra.mxu0 %v1092_v17  ;;  %v1125_v4 = vld [vmem:[%s1413_s1 + $0x120] sm:$0xff]   ;;  %v1129_v8 = vld [vmem:[%s1413_s1 + $0x128] sm:$0xff]   ;;  %v1134_v11 = vld [vmem:[%s1413_s1 + $0x1f0] sm:$0xff]   ;;  %v200_v17 = vrot.slane %v1278_v44, %v1258_v34 }
  0x14   :  { %965 = vmatprep.subr.bf16.mxu0 %v1095_v20  ;;  %v1127_v6 = vld [vmem:[%s1413_s1 + $0x1a0] sm:$0xff]   ;;  %v1131_v10 = vld [vmem:[%s1413_s1 + $0x1a8] sm:$0xff]   ;;  %v1133_v12 = vld [vmem:[%s1413_s1 + $0x130] sm:$0xff]   ;;  %v1149_v20 = vmov 0.0  }
  0x15   :  { %986 = vmatpush3.bf16.msra.mxu1 %v1094_v19  ;;  %v1136_v13 = vld [vmem:[%s1413_s1 + $0x178] sm:$0xff]   ;;  %v1135_v14 = vld [vmem:[%s1413_s1 + $0x1b0] sm:$0xff]   ;;  %v1140_v19 = vld [vmem:[%s1413_s1 + $0x200] sm:$0xff]   ;;  %v216_v21 = vcombine.high %v200_v17, %v200_v17 }
  0x16   :  { %987 = vmatprep.subr.bf16.mxu1 %v1097_v25  ;;  %v1138_v15 = vld [vmem:[%s1413_s1 + $0x1f8] sm:$0xff]   ;;  %v1141_v22 = vld [vmem:[%s1413_s1 + $0x208] sm:$0xff]   ;;  %v1142_v25 = vld [vmem:[%s1413_s1 + $0x210] sm:$0xff]  }
  0x17   :  { %966 = vmatpush3.bf16.msra.mxu0 %v1096_v24  ;;  %v1137_v16 = vld [vmem:[%s1413_s1 + $0x138] sm:$0xff]   ;;  %v882_v23 = vld.sshfl [vmem:[%s1414_s0 + $0x8] sm:$0x1 pattern:$0x75316420]  ;;  %v1146_v29 = vld [vmem:[%s1413_s1 + $0x230] sm:$0xff]  }
  0x18   :  { %967 = vmatprep.subr.bf16.mxu0 %v1099_v27  ;;  %v1139_v18 = vld [vmem:[%s1413_s1 + $0x1b8] sm:$0xff]   ;;  %v232_v24 = vrot.slane %v882_v23, %v1258_v34  ;;  %v1144_v27 = vld [vmem:[%s1413_s1 + $0x220] sm:$0xff]   ;;  %v1145_v28 = vld [vmem:[%s1413_s1 + $0x228] sm:$0xff]  }
  0x19   :  { %988 = vmatpush3.bf16.msra.mxu1 %v1098_v26  ;;  %v1143_v26 = vld [vmem:[%s1413_s1 + $0x218] sm:$0xff]  }
  0x1a   :  { %989 = vmatprep.subr.bf16.mxu1 %v1101_v31 }
  0x1b   :  { %968 = vmatpush3.bf16.msra.mxu0 %v1100_v30  ;;  %v1147_v30 = vld [vmem:[%s1413_s1 + $0x238] sm:$0xff]  }
  0x1c   :  { %969 = vmatprep.subr.bf16.mxu0 %v1103_v33 }
  0x1d   :  { %990 = vmatpush3.bf16.msra.mxu1 %v1102_v32  ;;  %v881_v32 = vld [vmem:[%s1415_s2] ss:$0 sm:$0xff] }
  0x1e   :  { %991 = vmatprep.subr.bf16.mxu1 %v1105_v36 }
  0x1f   :  { %970 = vmatpush3.bf16.msra.mxu0 %v1104_v35 }
  0x20   :  { %999 = vmatprep.subr.bf16.mxu0 %v1108_v41 }
  0x21   :  { %992 = vmatpush3.bf16.msra.mxu1 %v1107_v40 }
  0x22   :  { %1021 = vmatprep.subr.bf16.mxu1 %v1110_v45  ;;  %707 = vmatmul.mubr.bf16.vlgmr.msra.gmra.mrb[0].mxu0 %v193_v43 }
  0x23   :  { %1000 = vmatpush3.bf16.msra.mxu0 %v1109_v47  ;;  %786 = vmatprep.mubr.bf16.mxu0 %v214_v53 }
  0x24   :  { %747 = vmatmul.mubr.bf16.vlgmr.msra.gmra.mrb[0].mxu1 %v215_v49  ;;  %1001 = vmatprep.subr.bf16.mxu0 %v1112_v50 }
  0x25   :  { %1022 = vmatpush3.bf16.msra.mxu1 %v1111_v52  ;;  %826 = vmatprep.mubr.bf16.mxu1 %v218_v56 }
  0x26   :  { %1023 = vmatprep.subr.bf16.mxu1 %v1114_v54 }
  0x27   :  { %1002 = vmatpush3.bf16.msra.mxu0 %v1113_v55 }
  0x28   :  { %1003 = vmatprep.subr.bf16.mxu0 %v1116_v57 }
  0x29   :  { %1024 = vmatpush3.bf16.msra.mxu1 %v1115_v58 }
  0x2a   :  { %1025 = vmatprep.subr.bf16.mxu1 %v1118_v59 }
  0x2b   :  { %1004 = vmatpush3.bf16.msra.mxu0 %v1117_v60 }
  0x2c   :  { %1005 = vmatprep.subr.bf16.mxu0 %v1120_v61 }
  0x2d   :  { %1026 = vmatpush3.bf16.msra.mxu1 %v1119_v62 }
  0x2e   :  { %1027 = vmatprep.subr.bf16.mxu1 %v1122_v63 }
  0x2f   :  { %1006 = vmatpush3.bf16.msra.mxu0 %v1121_v0 }
  0x30   :  { %1007 = vmatprep.subr.bf16.mxu0 %v1124_v1 }
  0x31   :  { %1028 = vmatpush3.bf16.msra.mxu1 %v1123_v2 }
  0x32   :  { %1029 = vmatprep.subr.bf16.mxu1 %v1126_v3 }
  0x33   :  { %1008 = vmatpush3.bf16.msra.mxu0 %v1125_v4 }
  0x34   :  { %1009 = vmatprep.subr.bf16.mxu0 %v1128_v5 }
  0x35   :  { %1030 = vmatpush3.bf16.msra.mxu1 %v1127_v6 }
  0x36   :  { %1031 = vmatprep.subr.bf16.mxu1 %v1130_v7 }
  0x37   :  { %1010 = vmatpush3.bf16.msra.mxu0 %v1129_v8 }
  0x38   :  { %1011 = vmatprep.subr.bf16.mxu0 %v1132_v9 }
  0x39   :  { %1032 = vmatpush3.bf16.msra.mxu1 %v1131_v10 }
  0x3a   :  { %1033 = vmatprep.subr.bf16.mxu1 %v1134_v11 }
  0x3b   :  { %1012 = vmatpush3.bf16.msra.mxu0 %v1133_v12 }
  0x3c   :  { %1013 = vmatprep.subr.bf16.mxu0 %v1136_v13 }
  0x3d   :  { %1034 = vmatpush3.bf16.msra.mxu1 %v1135_v14 }
  0x3e   :  { %1035 = vmatprep.subr.bf16.mxu1 %v1138_v15 }
  0x3f   :  { %1014 = vmatpush3.bf16.msra.mxu0 %v1137_v16 }
  0x40   :  { %1052 = vmatprep.subr.bf16.mxu0 %v1149_v20 }
  0x41   :  { %1036 = vmatpush3.bf16.msra.mxu1 %v1139_v18 }
  0x42   :  { %787 = vmatmul.mubr.bf16.vlgmr.msra.gmra.mrb[4].mxu0 %v200_v17 }
  0x43   :  { %1053 = vmatpush3.bf16.msra.mxu0 %v1140_v19  ;;  %1068 = vmatprep.mubr.msk.bf16.mxu0 %vm1150_vm0, %v1149_v20 }
  0x44   :  { %827 = vmatmul.mubr.bf16.vlgmr.msra.gmra.mrb[4].mxu1 %v216_v21  ;;  %1054 = vmatprep.subr.bf16.mxu0 %v1149_v20 }
  0x47   :  { %1055 = vmatpush3.bf16.msra.mxu0 %v1141_v22 }
  0x48   :  { %1056 = vmatprep.subr.bf16.mxu0 %v1149_v20 }
  0x4b   :  { %1057 = vmatpush3.bf16.msra.mxu0 %v1142_v25 }
  0x4c   :  { %1058 = vmatprep.subr.bf16.mxu0 %v1149_v20 }
  0x4f   :  { %1059 = vmatpush3.bf16.msra.mxu0 %v1143_v26 }
  0x50   :  { %1060 = vmatprep.subr.bf16.mxu0 %v1149_v20 }
  0x53   :  { %1061 = vmatpush3.bf16.msra.mxu0 %v1144_v27 }
  0x54   :  { %1062 = vmatprep.subr.bf16.mxu0 %v1149_v20 }
  0x57   :  { %1063 = vmatpush3.bf16.msra.mxu0 %v1145_v28 }
  0x58   :  { %1064 = vmatprep.subr.bf16.mxu0 %v1149_v20 }
  0x5b   :  { %1065 = vmatpush3.bf16.msra.mxu0 %v1146_v29 }
  0x5c   :  { %1066 = vmatprep.subr.bf16.mxu0 %v1149_v20 }
  0x5f   :  { %1067 = vmatpush3.bf16.msra.mxu0 %v1147_v30 }
  0x62   :  { %1069 = vmatmul.mubr.bf16.vlgmr.msra.gmra.mrb[8].mxu0 %v232_v24 }
  0xf5   :  { %v971_v31 = vpop.f32.mrb[0].mxu0 }
  0xf6   :  { %v972_v33 = vpop.f32.mrb[1].mxu0 }
  0xf7   :  { %v973_v34 = vadd.f32 %v972_v33, %v971_v31  ;;  %v974_v35 = vpop.f32.mrb[2].mxu0  ;;  %v993_v36 = vpop.f32.mrb[0].mxu1 }
  0xf8   :  { %v975_v37 = vpop.f32.mrb[3].mxu0  ;;  %v994_v38 = vpop.f32.mrb[1].mxu1 }
  0xf9   :  { %v709_v39 = vadd.f32 %v973_v34, %v881_v32  ;;  %v995_v40 = vadd.f32 %v994_v38, %v993_v36  ;;  %v996_v41 = vpop.f32.mrb[2].mxu1 }
  0xfa   :  { %v997_v42 = vpop.f32.mrb[3].mxu1 }
  0xfb   :  { %v749_v43 = vadd.f32 %v995_v40, %v709_v39 }
 0x115   :  { %v1015_v44 = vpop.f32.mrb[4].mxu0 }
 0x116   :  { %v1016_v45 = vpop.f32.mrb[5].mxu0 }
 0x117   :  { %v1017_v46 = vadd.f32 %v1016_v45, %v1015_v44  ;;  %v1018_v47 = vpop.f32.mrb[6].mxu0  ;;  %v1037_v48 = vpop.f32.mrb[4].mxu1 }
 0x118   :  { %v1019_v49 = vpop.f32.mrb[7].mxu0  ;;  %v1038_v50 = vpop.f32.mrb[5].mxu1 }
 0x119   :  { %v789_v51 = vadd.f32 %v1017_v46, %v749_v43  ;;  %v1039_v52 = vadd.f32 %v1038_v50, %v1037_v48  ;;  %v1040_v53 = vpop.f32.mrb[6].mxu1 }
 0x11a   :  { %v1041_v54 = vpop.f32.mrb[7].mxu1 }
 0x11b   :  { %v829_v55 = vadd.f32 %v1039_v52, %v789_v51 }
 0x135   :  { %v868_v56 = vpop.f32.mrb[8].mxu0 }
 0x136   :  { %v869_v57 = vadd.f32 %v868_v56, %v829_v55  ;;  %v1070_v58 = vpop.f32.mrb[9].mxu0 }
 0x137   :  { %v871_v59 = vpop.f32.mrb[10].mxu0 }
 0x138   :  { %v874_v60 = vmax.f32 %v869_v57, 0.0  ;;  %v1071_v61 = vpop.f32.mrb[11].mxu0 }
 0x13a   :  { %v875_v62 = vpack.c.bf16 %v874_v60, %v874_v60 }
 0x13c   :  { %876 = vst [vmem:[%s1416_s3] sm:$0x1] %v875_v62 }

// kernel: unet_forward.15
= control target key start
LH: loop header
LB: loop body
LE: loop exit
PB: predicated region body
PF: predicated region fallthrough
CT: control target
= control target key end

     0   :  { %v608_v35 = vmov 0.0   ;;  %vm609_vm0 = vmmov 0   ;;  %vm330_vm1 = vcmask 523264   ;;  %s753_s1 = inlined_call_operand.vmem [shape: bf16[576,128], index: 1, kind: input, shape index: {}]   ;;  %s754_s0 = inlined_call_operand.vmem [shape: bf16[8,576], index: 0, kind: input, shape index: {}]   ;;  %s755_s2 = inlined_call_operand.vmem [shape: f32[1,128], index: 2, kind: input, shape index: {}]   ;;  %s756_s3 = inlined_call_operand.vmem [shape: bf16[8,128], index: 3, kind: output, shape index: {}]  }
   0x1   :  { %v567_v0 = vld [vmem:[%s753_s1 + $0x40] sm:$0xff]   ;;  %v571_v4 = vld [vmem:[%s753_s1 + $0x48] sm:$0xff]   ;;  %v575_v8 = vld [vmem:[%s753_s1 + $0x50] sm:$0xff]  }
   0x2   :  { %v568_v1 = vld [vmem:[%s753_s1] sm:$0xff]   ;;  %504 = vmatprep.subr.bf16.mxu0 %v567_v0  ;;  %v572_v5 = vld [vmem:[%s753_s1 + $0x8] sm:$0xff]   ;;  %v576_v9 = vld [vmem:[%s753_s1 + $0x10] sm:$0xff]  }
   0x3   :  { %v569_v2 = vld [vmem:[%s753_s1 + $0xc0] sm:$0xff]   ;;  %505 = vmatpush3.bf16.msra.mxu0 %v568_v1  ;;  %v573_v6 = vld [vmem:[%s753_s1 + $0xc8] sm:$0xff]   ;;  %v577_v10 = vld [vmem:[%s753_s1 + $0xd0] sm:$0xff]  }
   0x4   :  { %v570_v3 = vld [vmem:[%s753_s1 + $0x80] sm:$0xff]   ;;  %526 = vmatprep.subr.bf16.mxu1 %v569_v2  ;;  %506 = vmatprep.subr.bf16.mxu0 %v571_v4  ;;  %v574_v7 = vld [vmem:[%s753_s1 + $0x88] sm:$0xff]   ;;  %v578_v11 = vld [vmem:[%s753_s1 + $0x90] sm:$0xff]  }
   0x5   :  { %527 = vmatpush3.bf16.msra.mxu1 %v570_v3  ;;  %v579_v12 = vld [vmem:[%s753_s1 + $0x58] sm:$0xff]   ;;  %v583_v16 = vld [vmem:[%s753_s1 + $0x60] sm:$0xff]   ;;  %v587_v20 = vld [vmem:[%s753_s1 + $0x68] sm:$0xff]  }
   0x6   :  { %528 = vmatprep.subr.bf16.mxu1 %v573_v6  ;;  %v580_v13 = vld [vmem:[%s753_s1 + $0x18] sm:$0xff]   ;;  %v584_v17 = vld [vmem:[%s753_s1 + $0x20] sm:$0xff]   ;;  %v588_v21 = vld [vmem:[%s753_s1 + $0x28] sm:$0xff]  }
   0x7   :  { %507 = vmatpush3.bf16.msra.mxu0 %v572_v5  ;;  %v581_v14 = vld [vmem:[%s753_s1 + $0xd8] sm:$0xff]   ;;  %v585_v18 = vld [vmem:[%s753_s1 + $0xe0] sm:$0xff]   ;;  %v589_v22 = vld [vmem:[%s753_s1 + $0xe8] sm:$0xff]  }
   0x8   :  { %508 = vmatprep.subr.bf16.mxu0 %v575_v8  ;;  %v582_v15 = vld [vmem:[%s753_s1 + $0x98] sm:$0xff]   ;;  %v586_v19 = vld [vmem:[%s753_s1 + $0xa0] sm:$0xff]   ;;  %v590_v23 = vld [vmem:[%s753_s1 + $0xa8] sm:$0xff]  }
   0x9   :  { %529 = vmatpush3.bf16.msra.mxu1 %v574_v7  ;;  %v591_v24 = vld [vmem:[%s753_s1 + $0x70] sm:$0xff]   ;;  %v595_v28 = vld [vmem:[%s753_s1 + $0x78] sm:$0xff]   ;;  %v15_v31 = vld [vmem:[%s754_s0] sm:$0xff] }
   0xa   :  { %530 = vmatprep.subr.bf16.mxu1 %v577_v10  ;;  %v592_v25 = vld [vmem:[%s753_s1 + $0x30] sm:$0xff]   ;;  %v596_v29 = vld [vmem:[%s753_s1 + $0x38] sm:$0xff]   ;;  %v462_v32 = vcombine.low %v15_v31, %v15_v31  ;;  %v463_v33 = vcombine.high %v15_v31, %v15_v31  ;;  %v16_v36 = vld [vmem:[%s754_s0 + $0x8] sm:$0xff] }
   0xb   :  { %509 = vmatpush3.bf16.msra.mxu0 %v576_v9  ;;  %v593_v26 = vld [vmem:[%s753_s1 + $0xf0] sm:$0xff]   ;;  %v597_v30 = vld [vmem:[%s753_s1 + $0xf8] sm:$0xff]   ;;  %v464_v37 = vcombine.low %v16_v36, %v16_v36  ;;  %v465_v38 = vcombine.high %v16_v36, %v16_v36  ;;  %v604_v39 = vld [vmem:[%s753_s1 + $0x100] sm:$0xff]  }
   0xc   :  { %510 = vmatprep.subr.bf16.mxu0 %v579_v12  ;;  %v594_v27 = vld [vmem:[%s753_s1 + $0xb0] sm:$0xff]   ;;  %v601_v34 = vld [vmem:[%s753_s1 + $0xb8] sm:$0xff]   ;;  %366 = vmatprep.mubr.bf16.mxu0 %v463_v33  ;;  %v605_v40 = vld [vmem:[%s753_s1 + $0x108] sm:$0xff]  }
   0xd   :  { %531 = vmatpush3.bf16.msra.mxu1 %v578_v11  ;;  %406 = vmatprep.mubr.bf16.mxu1 %v465_v38  ;;  %v606_v41 = vld [vmem:[%s753_s1 + $0x110] sm:$0xff]   ;;  %v607_v42 = vld [vmem:[%s753_s1 + $0x118] sm:$0xff]   ;;  %v461_v45 = vld [vmem:[%s755_s2] ss:$0 sm:$0xff] }
   0xe   :  { %532 = vmatprep.subr.bf16.mxu1 %v581_v14  ;;  %v600_v43 = vld [vmem:[%s754_s0 + $0x10] ss:$0 sps:$4 sm:$0xff]  }
   0xf   :  { %511 = vmatpush3.bf16.msra.mxu0 %v580_v13 }
  0x10   :  { %512 = vmatprep.subr.bf16.mxu0 %v583_v16 }
  0x11   :  { %533 = vmatpush3.bf16.msra.mxu1 %v582_v15 }
  0x12   :  { %534 = vmatprep.subr.bf16.mxu1 %v585_v18 }
  0x13   :  { %513 = vmatpush3.bf16.msra.mxu0 %v584_v17 }
  0x14   :  { %514 = vmatprep.subr.bf16.mxu0 %v587_v20 }
  0x15   :  { %535 = vmatpush3.bf16.msra.mxu1 %v586_v19 }
  0x16   :  { %536 = vmatprep.subr.bf16.mxu1 %v589_v22 }
  0x17   :  { %515 = vmatpush3.bf16.msra.mxu0 %v588_v21 }
  0x18   :  { %516 = vmatprep.subr.bf16.mxu0 %v591_v24 }
  0x19   :  { %537 = vmatpush3.bf16.msra.mxu1 %v590_v23 }
  0x1a   :  { %538 = vmatprep.subr.bf16.mxu1 %v593_v26 }
  0x1b   :  { %517 = vmatpush3.bf16.msra.mxu0 %v592_v25 }
  0x1c   :  { %518 = vmatprep.subr.bf16.mxu0 %v595_v28 }
  0x1d   :  { %539 = vmatpush3.bf16.msra.mxu1 %v594_v27 }
  0x1e   :  { %540 = vmatprep.subr.bf16.mxu1 %v597_v30 }
  0x1f   :  { %519 = vmatpush3.bf16.msra.mxu0 %v596_v29 }
  0x20   :  { %553 = vmatprep.subr.bf16.mxu0 %v608_v35 }
  0x21   :  { %541 = vmatpush3.bf16.msra.mxu1 %v601_v34 }
  0x22   :  { %367 = vmatmul.mubr.bf16.vlgmr.msra.gmra.mrb[0].mxu0 %v462_v32 }
  0x23   :  { %554 = vmatpush3.bf16.msra.mxu0 %v604_v39  ;;  %561 = vmatprep.mubr.msk.bf16.mxu0 %vm609_vm0, %v608_v35 }
  0x24   :  { %407 = vmatmul.mubr.bf16.vlgmr.msra.gmra.mrb[0].mxu1 %v464_v37  ;;  %555 = vmatprep.subr.bf16.mxu0 %v608_v35 }
  0x27   :  { %556 = vmatpush3.bf16.msra.mxu0 %v605_v40 }
  0x28   :  { %557 = vmatprep.subr.bf16.mxu0 %v608_v35 }
  0x2b   :  { %558 = vmatpush3.bf16.msra.mxu0 %v606_v41 }
  0x2c   :  { %559 = vmatprep.subr.bf16.mxu0 %v608_v35 }
  0x2f   :  { %560 = vmatpush3.bf16.msra.mxu0 %v607_v42 }
  0x32   :  { %562 = vmatmul.mubr.msk.bf16.vlgmr.msra.gmra.mrb[4].mxu0 %vm330_vm1, %v600_v43 }
  0xf5   :  { %v520_v44 = vpop.f32.mrb[0].mxu0 }
  0xf6   :  { %v521_v46 = vpop.f32.mrb[1].mxu0 }
  0xf7   :  { %v522_v47 = vadd.f32 %v521_v46, %v520_v44  ;;  %v523_v48 = vpop.f32.mrb[2].mxu0  ;;  %v542_v49 = vpop.f32.mrb[0].mxu1 }
  0xf8   :  { %v524_v50 = vpop.f32.mrb[3].mxu0  ;;  %v543_v51 = vpop.f32.mrb[1].mxu1 }
  0xf9   :  { %v369_v52 = vadd.f32 %v522_v47, %v461_v45  ;;  %v544_v53 = vadd.f32 %v543_v51, %v542_v49  ;;  %v545_v54 = vpop.f32.mrb[2].mxu1 }
  0xfa   :  { %v546_v55 = vpop.f32.mrb[3].mxu1 }
  0xfb   :  { %v409_v56 = vadd.f32 %v544_v53, %v369_v52 }
 0x105   :  { %v448_v57 = vpop.f32.mrb[4].mxu0 }
 0x106   :  { %v449_v58 = vadd.f32 %v448_v57, %v409_v56  ;;  %v563_v59 = vpop.f32.mrb[5].mxu0 }
 0x107   :  { %v451_v60 = vpop.f32.mrb[6].mxu0 }
 0x108   :  { %v454_v61 = vmax.f32 %v449_v58, 0.0  ;;  %v564_v62 = vpop.f32.mrb[7].mxu0 }
 0x10a   :  { %v455_v63 = vpack.c.bf16 %v454_v61, %v454_v61 }
 0x10c   :  { %456 = vst [vmem:[%s756_s3] sm:$0xf] %v455_v63 }

// kernel: unet_forward.16
= control target key start
LH: loop header
LB: loop body
LE: loop exit
PB: predicated region body
PF: predicated region fallthrough
CT: control target
= control target key end

     0   :  { %vm204_vm0 = vcmask 261120   ;;  %s550_s1 = inlined_call_operand.vmem [shape: bf16[288,128], index: 1, kind: input, shape index: {}]   ;;  %s551_s0 = inlined_call_operand.vmem [shape: bf16[32,288], index: 0, kind: input, shape index: {}]   ;;  %s552_s2 = inlined_call_operand.vmem [shape: f32[1,128], index: 2, kind: input, shape index: {}]   ;;  %s553_s3 = inlined_call_operand.vmem [shape: bf16[32,128], index: 3, kind: output, shape index: {}]  }
   0x1   :  { %v423_v0 = vld [vmem:[%s550_s1 + $0x40] sm:$0xff]   ;;  %v425_v2 = vld [vmem:[%s550_s1 + $0x48] sm:$0xff]   ;;  %v427_v4 = vld [vmem:[%s550_s1 + $0x50] sm:$0xff]  }
   0x2   :  { %v424_v1 = vld [vmem:[%s550_s1] sm:$0xff]   ;;  %383 = vmatprep.subr.bf16.mxu0 %v423_v0  ;;  %v426_v3 = vld [vmem:[%s550_s1 + $0x8] sm:$0xff]   ;;  %v428_v5 = vld [vmem:[%s550_s1 + $0x10] sm:$0xff]  }
   0x3   :  { %384 = vmatpush3.bf16.msra.mxu0 %v424_v1  ;;  %v429_v6 = vld [vmem:[%s550_s1 + $0x58] sm:$0xff]   ;;  %v431_v8 = vld [vmem:[%s550_s1 + $0x60] sm:$0xff]   ;;  %v433_v11 = vld [vmem:[%s550_s1 + $0x68] sm:$0xff]  }
   0x4   :  { %385 = vmatprep.subr.bf16.mxu0 %v425_v2  ;;  %v430_v7 = vld [vmem:[%s550_s1 + $0x18] sm:$0xff]   ;;  %v432_v9 = vld [vmem:[%s550_s1 + $0x20] sm:$0xff]   ;;  %v434_v12 = vld [vmem:[%s550_s1 + $0x28] sm:$0xff]  }
   0x5   :  { %v438_v10 = vld [vmem:[%s550_s1 + $0x80] sm:$0xff]   ;;  %v435_v13 = vld [vmem:[%s550_s1 + $0x70] sm:$0xff]   ;;  %v443_v15 = vld [vmem:[%s550_s1 + $0x88] sm:$0xff]  }
   0x6   :  { %415 = vmatprep.subr.bf16.mxu1 %v438_v10  ;;  %v442_v14 = vld [vmem:[%s551_s0 + $0x4] ss:$12 sps:$4 sm:$0xff]   ;;  %v444_v16 = vld [vmem:[%s551_s0 + $0x8] ss:$12 sps:$4 sm:$0xff]   ;;  %v445_v17 = vld [vmem:[%s551_s0 + $0x20] ss:$12 sps:$4 sm:$0xff]  }
   0x7   :  { %386 = vmatpush3.bf16.msra.mxu0 %v426_v3  ;;  %416 = vmatpush3.bf16.msra.mxu1 %v438_v10  ;;  %v436_v18 = vld [vmem:[%s550_s1 + $0x30] sm:$0xff]   ;;  %v437_v19 = vld [vmem:[%s550_s1 + $0x78] sm:$0xff]   ;;  %v440_v21 = vld [vmem:[%s551_s0] ss:$12 sps:$4 sm:$0xff]  }
   0x8   :  { %387 = vmatprep.subr.bf16.mxu0 %v427_v4  ;;  %243 = vmatprep.mubr.bf16.mxu0 %v442_v14  ;;  %v439_v20 = vld [vmem:[%s550_s1 + $0x38] sm:$0xff]   ;;  %v337_v30 = vld [vmem:[%s552_s2] ss:$0 sm:$0xff] }
   0x9   :  { %417 = vmatprep.subr.bf16.mxu1 %v443_v15  ;;  %419 = vmatprep.mubr.msk.bf16.mxu1 %vm204_vm0, %v444_v16  ;;  %v446_v22 = vld [vmem:[%s551_s0 + $0x1c] ss:$12 sps:$4 sm:$0xff]   ;;  %v448_v23 = vld [vmem:[%s551_s0 + $0x18] ss:$12 sps:$4 sm:$0xff]  }
   0xb   :  { %388 = vmatpush3.bf16.msra.mxu0 %v428_v5  ;;  %418 = vmatpush3.bf16.msra.mxu1 %v443_v15 }
   0xc   :  { %389 = vmatprep.subr.bf16.mxu0 %v429_v6 }
   0xe   :  { %420 = vmatmul.mubr.msk.bf16.vlgmr.msra.gmra.mrb[0].mxu1 %vm204_vm0, %v445_v17 }
   0xf   :  { %390 = vmatpush3.bf16.msra.mxu0 %v430_v7 }
  0x10   :  { %391 = vmatprep.subr.bf16.mxu0 %v431_v8 }
  0x13   :  { %392 = vmatpush3.bf16.msra.mxu0 %v432_v9 }
  0x14   :  { %393 = vmatprep.subr.bf16.mxu0 %v433_v11 }
  0x17   :  { %394 = vmatpush3.bf16.msra.mxu0 %v434_v12 }
  0x18   :  { %395 = vmatprep.subr.bf16.mxu0 %v435_v13 }
  0x1b   :  { %396 = vmatpush3.bf16.msra.mxu0 %v436_v18 }
  0x1c   :  { %397 = vmatprep.subr.bf16.mxu0 %v437_v19 }
  0x1f   :  { %398 = vmatpush3.bf16.msra.mxu0 %v439_v20 }
  0x22   :  { %244 = vmatmul.mubr.bf16.vlgmr.msra.gmra.mrb[0].mxu0 %v440_v21 }
  0x23   :  { %251 = vmatprep.mubr.bf16.mxu0 %v446_v22 }
  0x2a   :  { %252 = vmatmul.mubr.bf16.gmra.mrb[4].mxu0 %v448_v23 }
  0xe1   :  { %v421_v24 = vpop.f32.mrb[0].mxu1 }
  0xe2   :  { %v294_v25 = vpop.f32.mrb[1].mxu1 }
  0xe3   :  { %v422_v26 = vpop.f32.mrb[2].mxu1 }
  0xe4   :  { %v297_v27 = vpop.f32.mrb[3].mxu1 }
  0xf5   :  { %v399_v28 = vpop.f32.mrb[0].mxu0 }
  0xf6   :  { %v400_v29 = vpop.f32.mrb[1].mxu0 }
  0xf7   :  { %v401_v31 = vadd.f32 %v400_v29, %v399_v28  ;;  %v402_v32 = vpop.f32.mrb[2].mxu0 }
  0xf8   :  { %v403_v33 = vpop.f32.mrb[3].mxu0 }
  0xf9   :  { %v404_v34 = vadd.f32 %v403_v33, %v402_v32  ;;  %v246_v35 = vadd.f32 %v401_v31, %v337_v30 }
  0xfb   :  { %v295_v36 = vadd.f32 %v294_v25, %v246_v35  ;;  %v249_v37 = vadd.f32 %v404_v34, %v337_v30 }
  0xfd   :  { %v298_v38 = vadd.f32 %v297_v27, %v249_v37  ;;  %v405_v39 = vpop.f32.mrb[4].mxu0  ;;  %v309_v41 = vmax.f32 %v295_v36, 0.0 }
  0xfe   :  { %v406_v40 = vpop.f32.mrb[5].mxu0 }
  0xff   :  { %v310_v42 = vmax.f32 %v298_v38, 0.0  ;;  %v407_v43 = vadd.f32 %v406_v40, %v405_v39  ;;  %v408_v44 = vpop.f32.mrb[6].mxu0 }
 0x100   :  { %v409_v45 = vpop.f32.mrb[7].mxu0 }
 0x101   :  { %v375_v46 = vpack.c.bf16 %v310_v42, %v309_v41  ;;  %v254_v47 = vadd.f32 %v407_v43, %v337_v30  ;;  %v410_v48 = vadd.f32 %v409_v45, %v408_v44 }
 0x103   :  { %376 = vst [vmem:[%s553_s3] sm:$0xff] %v375_v46   ;;  %v303_v49 = vadd.f32 %v421_v24, %v254_v47  ;;  %v257_v50 = vadd.f32 %v410_v48, %v337_v30 }
 0x105   :  { %v306_v51 = vadd.f32 %v422_v26, %v257_v50  ;;  %v311_v52 = vmax.f32 %v303_v49, 0.0 }
 0x107   :  { %v312_v53 = vmax.f32 %v306_v51, 0.0 }
 0x109   :  { %v380_v54 = vpack.c.bf16 %v312_v53, %v311_v52 }
 0x10b   :  { %382 = vst [vmem:[%s553_s3 + $0x8] sm:$0xff] %v380_v54  }

// kernel: unet_forward.17
= control target key start
LH: loop header
LB: loop body
LE: loop exit
PB: predicated region body
PF: predicated region fallthrough
CT: control target
= control target key end

     0   :  { %v586_v0 = vmov 0   ;;  %vm182_vm0 = vcmask 130048   ;;  %s759_s1 = inlined_call_operand.vmem [shape: bf16[144,128], index: 1, kind: input, shape index: {}]   ;;  %s760_s0 = inlined_call_operand.vmem [shape: bf16[128,144], index: 0, kind: input, shape index: {}]   ;;  %s761_s2 = inlined_call_operand.vmem [shape: f32[1,128], index: 2, kind: input, shape index: {}]   ;;  %s762_s3 = inlined_call_operand.vmem [shape: f32[128,128], index: 3, kind: output, shape index: {}]  }
   0x1   :  { %207 = vmatprep.subr.bf16.mxu0 %v586_v0  ;;  %470 = vmatprep.subr.bf16.mxu1 %v586_v0  ;;  %v489_v1 = vld [vmem:[%s759_s1] sm:$0xff]   ;;  %v490_v2 = vld [vmem:[%s759_s1 + $0x8] sm:$0xff]   ;;  %v491_v3 = vld [vmem:[%s759_s1 + $0x10] sm:$0xff]  }
   0x2   :  { %208 = vmatpush1.bf16.msra.mxu0 %v489_v1  ;;  %479 = vmatpush1.bf16.msra.mxu1 %v489_v1  ;;  %v492_v4 = vld [vmem:[%s759_s1 + $0x18] sm:$0xff]   ;;  %v500_v5 = vld [vmem:[%s760_s0 + $0x4] ss:$8 sps:$4 sm:$0xff]   ;;  %v495_v9 = vld [vmem:[%s759_s1 + $0x30] sm:$0xff]  }
   0x3   :  { %209 = vmatprep.subr.bf16.mxu0 %v586_v0  ;;  %471 = vmatprep.subr.bf16.mxu1 %v586_v0  ;;  %v503_v6 = vld [vmem:[%s760_s0 + $0x44] ss:$8 sps:$4 sm:$0xff]   ;;  %v496_v10 = vld [vmem:[%s759_s1 + $0x38] sm:$0xff]   ;;  %v498_v12 = vld [vmem:[%s760_s0] ss:$8 sps:$4 sm:$0xff]  }
   0x4   :  { %462 = vmatprep.mubr.msk.bf16.mxu0 %vm182_vm0, %v500_v5  ;;  %466 = vmatprep.mubr.msk.bf16.mxu1 %vm182_vm0, %v503_v6  ;;  %v493_v7 = vld [vmem:[%s759_s1 + $0x20] sm:$0xff]   ;;  %v494_v8 = vld [vmem:[%s759_s1 + $0x28] sm:$0xff]   ;;  %v504_v14 = vld [vmem:[%s760_s0 + $0x14] ss:$8 sps:$4 sm:$0xff]  }
   0x5   :  { %v497_v11 = vld [vmem:[%s759_s1 + $0x40] sm:$0xff]   ;;  %v506_v15 = vld [vmem:[%s760_s0 + $0x54] ss:$8 sps:$4 sm:$0xff]   ;;  %v508_v16 = vld [vmem:[%s760_s0 + $0x10] ss:$8 sps:$4 sm:$0xff]  }
   0x6   :  { %210 = vmatpush1.bf16.msra.mxu0 %v490_v2  ;;  %480 = vmatpush1.bf16.msra.mxu1 %v490_v2  ;;  %v501_v13 = vld [vmem:[%s760_s0 + $0x40] ss:$8 sps:$4 sm:$0xff]   ;;  %v509_v17 = vld [vmem:[%s760_s0 + $0x50] ss:$8 sps:$4 sm:$0xff]   ;;  %v510_v18 = vld [vmem:[%s760_s0 + $0x24] ss:$8 sps:$4 sm:$0xff]  }
   0x7   :  { %211 = vmatprep.subr.bf16.mxu0 %v586_v0  ;;  %472 = vmatprep.subr.bf16.mxu1 %v586_v0  ;;  %v512_v19 = vld [vmem:[%s760_s0 + $0x64] ss:$8 sps:$4 sm:$0xff]   ;;  %v514_v20 = vld [vmem:[%s760_s0 + $0x20] ss:$8 sps:$4 sm:$0xff]   ;;  %v516_v22 = vld [vmem:[%s760_s0 + $0x34] ss:$8 sps:$4 sm:$0xff]  }
   0x8   :  { %v515_v21 = vld [vmem:[%s760_s0 + $0x60] ss:$8 sps:$4 sm:$0xff]   ;;  %v518_v23 = vld [vmem:[%s760_s0 + $0x74] ss:$8 sps:$4 sm:$0xff]   ;;  %v520_v24 = vld [vmem:[%s760_s0 + $0x30] ss:$8 sps:$4 sm:$0xff]  }
   0x9   :  { %v521_v25 = vld [vmem:[%s760_s0 + $0x70] ss:$8 sps:$4 sm:$0xff]   ;;  %v693_v26 = vld [vmem:[%s761_s2] ss:$0 sm:$0xff] }
   0xa   :  { %212 = vmatpush1.bf16.msra.mxu0 %v491_v3  ;;  %481 = vmatpush1.bf16.msra.mxu1 %v491_v3 }
   0xb   :  { %213 = vmatprep.subr.bf16.mxu0 %v586_v0  ;;  %473 = vmatprep.subr.bf16.mxu1 %v586_v0 }
   0xe   :  { %214 = vmatpush1.bf16.msra.mxu0 %v492_v4  ;;  %482 = vmatpush1.bf16.msra.mxu1 %v492_v4 }
   0xf   :  { %215 = vmatprep.subr.bf16.mxu0 %v586_v0  ;;  %474 = vmatprep.subr.bf16.mxu1 %v586_v0 }
  0x12   :  { %216 = vmatpush1.bf16.msra.mxu0 %v493_v7  ;;  %483 = vmatpush1.bf16.msra.mxu1 %v493_v7 }
  0x13   :  { %217 = vmatprep.subr.bf16.mxu0 %v586_v0  ;;  %475 = vmatprep.subr.bf16.mxu1 %v586_v0 }
  0x16   :  { %218 = vmatpush1.bf16.msra.mxu0 %v494_v8  ;;  %484 = vmatpush1.bf16.msra.mxu1 %v494_v8 }
  0x17   :  { %219 = vmatprep.subr.bf16.mxu0 %v586_v0  ;;  %476 = vmatprep.subr.bf16.mxu1 %v586_v0 }
  0x1a   :  { %220 = vmatpush1.bf16.msra.mxu0 %v495_v9  ;;  %485 = vmatpush1.bf16.msra.mxu1 %v495_v9 }
  0x1b   :  { %221 = vmatprep.subr.bf16.mxu0 %v586_v0  ;;  %477 = vmatprep.subr.bf16.mxu1 %v586_v0 }
  0x1e   :  { %222 = vmatpush1.bf16.msra.mxu0 %v496_v10  ;;  %486 = vmatpush1.bf16.msra.mxu1 %v496_v10 }
  0x1f   :  { %223 = vmatprep.subr.bf16.mxu0 %v586_v0  ;;  %478 = vmatprep.subr.bf16.mxu1 %v586_v0 }
  0x22   :  { %224 = vmatpush1.bf16.msra.mxu0 %v497_v11  ;;  %487 = vmatpush1.bf16.msra.mxu1 %v497_v11 }
  0x25   :  { %240 = vmatmul.mubr.bf16.vlgmr.msra.gmra.mrb[0].mxu0 %v498_v12  ;;  %272 = vmatmul.mubr.bf16.vlgmr.msra.gmra.mrb[0].mxu1 %v501_v13 }
  0x26   :  { %463 = vmatprep.mubr.msk.bf16.mxu0 %vm182_vm0, %v504_v14  ;;  %467 = vmatprep.mubr.msk.bf16.mxu1 %vm182_vm0, %v506_v15 }
  0x2d   :  { %248 = vmatmul.mubr.bf16.gmra.mrb[4].mxu0 %v508_v16  ;;  %280 = vmatmul.mubr.bf16.gmra.mrb[4].mxu1 %v509_v17 }
  0x2e   :  { %464 = vmatprep.mubr.msk.bf16.mxu0 %vm182_vm0, %v510_v18  ;;  %468 = vmatprep.mubr.msk.bf16.mxu1 %vm182_vm0, %v512_v19 }
  0x35   :  { %256 = vmatmul.mubr.bf16.gmra.mrb[8].mxu0 %v514_v20  ;;  %288 = vmatmul.mubr.bf16.gmra.mrb[8].mxu1 %v515_v21 }
  0x36   :  { %465 = vmatprep.mubr.msk.bf16.mxu0 %vm182_vm0, %v516_v22  ;;  %469 = vmatprep.mubr.msk.bf16.mxu1 %vm182_vm0, %v518_v23 }
  0x3d   :  { %264 = vmatmul.mubr.bf16.gmra.mrb[12].mxu0 %v520_v24  ;;  %296 = vmatmul.mubr.bf16.gmra.mrb[12].mxu1 %v521_v25 }
  0xf8   :  { %v241_v27 = vpop.f32.mrb[0].mxu0  ;;  %v273_v28 = vpop.f32.mrb[0].mxu1 }
  0xf9   :  { %v242_v29 = vadd.f32 %v693_v26, %v241_v27  ;;  %v274_v30 = vadd.f32 %v693_v26, %v273_v28  ;;  %v243_v31 = vpop.f32.mrb[1].mxu0  ;;  %v275_v32 = vpop.f32.mrb[1].mxu1 }
  0xfa   :  { %v244_v33 = vpop.f32.mrb[2].mxu0  ;;  %v276_v34 = vpop.f32.mrb[2].mxu1 }
  0xfb   :  { %v304_v35 = vsub.f32 0.0, %v242_v29  ;;  %v312_v36 = vsub.f32 0.0, %v274_v30  ;;  %v245_v37 = vadd.f32 %v693_v26, %v244_v33  ;;  %v277_v38 = vadd.f32 %v693_v26, %v276_v34  ;;  %v246_v39 = vpop.f32.mrb[3].mxu0  ;;  %v278_v40 = vpop.f32.mrb[3].mxu1 }
  0xfd   :  { %v320_v41 = vmul.f32 1.442695, %v304_v35  ;;  %v336_v42 = vmul.f32 1.442695, %v312_v36  ;;  %v305_v43 = vsub.f32 0.0, %v245_v37  ;;  %v313_v44 = vsub.f32 0.0, %v277_v38 }
  0xff   :  { %522 = vpow2.f32 %v320_v41  ;;  %v322_v45 = vmul.f32 1.442695, %v305_v43  ;;  %v338_v46 = vmul.f32 1.442695, %v313_v44 }
 0x100   :  { %524 = vpow2.f32 %v336_v42  ;;  %v249_v47 = vpop.f32.mrb[4].mxu0  ;;  %v281_v48 = vpop.f32.mrb[4].mxu1 }
 0x101   :  { %526 = vpow2.f32 %v322_v45  ;;  %v250_v49 = vadd.f32 %v693_v26, %v249_v47  ;;  %v282_v50 = vadd.f32 %v693_v26, %v281_v48  ;;  %v251_v51 = vpop.f32.mrb[5].mxu0  ;;  %v283_v52 = vpop.f32.mrb[5].mxu1 }
 0x102   :  { %528 = vpow2.f32 %v338_v46  ;;  %v252_v53 = vpop.f32.mrb[6].mxu0  ;;  %v284_v54 = vpop.f32.mrb[6].mxu1 }
 0x103   :  { %v306_v55 = vsub.f32 0.0, %v250_v49  ;;  %v314_v56 = vsub.f32 0.0, %v282_v50  ;;  %v253_v57 = vadd.f32 %v693_v26, %v252_v53  ;;  %v285_v58 = vadd.f32 %v693_v26, %v284_v54  ;;  %v254_v59 = vpop.f32.mrb[7].mxu0  ;;  %v286_v60 = vpop.f32.mrb[7].mxu1 }
 0x105   :  { %v324_v61 = vmul.f32 1.442695, %v306_v55  ;;  %v340_v62 = vmul.f32 1.442695, %v314_v56  ;;  %v307_v63 = vsub.f32 0.0, %v253_v57  ;;  %v315_v0 = vsub.f32 0.0, %v285_v58 }
 0x107   :  { %530 = vpow2.f32 %v324_v61  ;;  %v326_v1 = vmul.f32 1.442695, %v307_v63  ;;  %v342_v2 = vmul.f32 1.442695, %v315_v0 }
 0x108   :  { %532 = vpow2.f32 %v340_v62  ;;  %v257_v3 = vpop.f32.mrb[8].mxu0  ;;  %v289_v4 = vpop.f32.mrb[8].mxu1 }
 0x109   :  { %v523_v5 = vpop.eup %522  ;;  %534 = vpow2.f32 %v326_v1  ;;  %v258_v6 = vadd.f32 %v693_v26, %v257_v3  ;;  %v290_v7 = vadd.f32 %v693_v26, %v289_v4  ;;  %v259_v8 = vpop.f32.mrb[9].mxu0 }
 0x10a   :  { %v291_v9 = vpop.f32.mrb[9].mxu1  ;;  %v525_v10 = vpop.eup %524  ;;  %v352_v11 = vadd.f32 1.0, %v523_v5  ;;  %536 = vpow2.f32 %v342_v2 }
 0x10b   :  { %v260_v12 = vpop.f32.mrb[10].mxu0  ;;  %v292_v13 = vpop.f32.mrb[10].mxu1  ;;  %v360_v15 = vadd.f32 1.0, %v525_v10  ;;  %v308_v16 = vsub.f32 0.0, %v258_v6  ;;  %v316_v17 = vsub.f32 0.0, %v290_v7 }
 0x10c   :  { %v527_v14 = vpop.eup %526  ;;  %v261_v18 = vadd.f32 %v693_v26, %v260_v12  ;;  %v262_v19 = vpop.f32.mrb[11].mxu0  ;;  %538 = vrcp.f32 %v352_v11  ;;  %v293_v23 = vadd.f32 %v693_v26, %v292_v13 }
 0x10d   :  { %v294_v20 = vpop.f32.mrb[11].mxu1  ;;  %v529_v21 = vpop.eup %528  ;;  %v353_v22 = vadd.f32 1.0, %v527_v14  ;;  %540 = vrcp.f32 %v360_v15  ;;  %v328_v25 = vmul.f32 1.442695, %v308_v16  ;;  %v344_v27 = vmul.f32 1.442695, %v316_v17 }
 0x10e   :  { %v361_v24 = vadd.f32 1.0, %v529_v21  ;;  %v309_v28 = vsub.f32 0.0, %v261_v18  ;;  %v317_v29 = vsub.f32 0.0, %v293_v23 }
 0x10f   :  { %542 = vrcp.f32 %v353_v22 }
 0x110   :  { %544 = vrcp.f32 %v361_v24  ;;  %v330_v30 = vmul.f32 1.442695, %v309_v28  ;;  %v346_v31 = vmul.f32 1.442695, %v317_v29  ;;  %v265_v32 = vpop.f32.mrb[12].mxu0  ;;  %v297_v33 = vpop.f32.mrb[12].mxu1 }
 0x111   :  { %546 = vpow2.f32 %v328_v25  ;;  %v531_v34 = vpop.eup %530  ;;  %v266_v35 = vadd.f32 %v693_v26, %v265_v32  ;;  %v298_v36 = vadd.f32 %v693_v26, %v297_v33  ;;  %v267_v37 = vpop.f32.mrb[13].mxu0 }
 0x112   :  { %548 = vpow2.f32 %v344_v27  ;;  %v299_v38 = vpop.f32.mrb[13].mxu1  ;;  %v533_v39 = vpop.eup %532  ;;  %v354_v40 = vadd.f32 1.0, %v531_v34 }
 0x113   :  { %550 = vpow2.f32 %v330_v30  ;;  %v268_v41 = vpop.f32.mrb[14].mxu0  ;;  %v300_v42 = vpop.f32.mrb[14].mxu1  ;;  %v362_v44 = vadd.f32 1.0, %v533_v39  ;;  %v310_v45 = vsub.f32 0.0, %v266_v35  ;;  %v318_v46 = vsub.f32 0.0, %v298_v36 }
 0x114   :  { %v535_v43 = vpop.eup %534  ;;  %552 = vpow2.f32 %v346_v31  ;;  %v270_v47 = vpop.f32.mrb[15].mxu0  ;;  %v269_v51 = vadd.f32 %v693_v26, %v268_v41  ;;  %v301_v52 = vadd.f32 %v693_v26, %v300_v42 }
 0x115   :  { %v302_v48 = vpop.f32.mrb[15].mxu1  ;;  %v537_v49 = vpop.eup %536  ;;  %554 = vrcp.f32 %v354_v40  ;;  %v355_v50 = vadd.f32 1.0, %v535_v43  ;;  %v332_v54 = vmul.f32 1.442695, %v310_v45  ;;  %v348_v55 = vmul.f32 1.442695, %v318_v46 }
 0x116   :  { %556 = vrcp.f32 %v362_v44  ;;  %v363_v53 = vadd.f32 1.0, %v537_v49  ;;  %v539_v56 = vpop.eup %538  ;;  %v311_v57 = vsub.f32 0.0, %v269_v51  ;;  %v319_v58 = vsub.f32 0.0, %v301_v52 }
 0x117   :  { %558 = vrcp.f32 %v355_v50  ;;  %v541_v59 = vpop.eup %540  ;;  %v384_v60 = vmax.f32 %v539_v56, 0.0 }
 0x118   :  { %560 = vrcp.f32 %v363_v53  ;;  %v392_v62 = vmax.f32 %v541_v59, 0.0  ;;  %v334_v63 = vmul.f32 1.442695, %v311_v57  ;;  %v350_v0 = vmul.f32 1.442695, %v319_v58 }
 0x119   :  { %v543_v61 = vpop.eup %542  ;;  %562 = vpow2.f32 %v332_v54  ;;  %v400_v2 = vmin.f32 %v384_v60, 1.0 }
 0x11a   :  { %v545_v1 = vpop.eup %544  ;;  %v385_v3 = vmax.f32 %v543_v61, 0.0  ;;  %564 = vpow2.f32 %v348_v55  ;;  %v408_v4 = vmin.f32 %v392_v62, 1.0 }
 0x11b   :  { %v547_v26 = vpop.eup %546  ;;  %v393_v5 = vmax.f32 %v545_v1, 0.0  ;;  %566 = vpow2.f32 %v334_v63  ;;  %416 = vst [vmem:[%s762_s3] sm:$0xff] %v400_v2 }
 0x11c   :  { %v549_v6 = vpop.eup %548  ;;  %v401_v7 = vmin.f32 %v385_v3, 1.0  ;;  %v356_v8 = vadd.f32 1.0, %v547_v26  ;;  %568 = vpow2.f32 %v350_v0  ;;  %424 = vst [vmem:[%s762_s3 + $0x40] sm:$0xff] %v408_v4 }
 0x11d   :  { %v551_v9 = vpop.eup %550  ;;  %v409_v10 = vmin.f32 %v393_v5, 1.0  ;;  %v364_v11 = vadd.f32 1.0, %v549_v6 }
 0x11e   :  { %v553_v12 = vpop.eup %552  ;;  %417 = vst [vmem:[%s762_s3 + $0x8] sm:$0xff] %v401_v7  ;;  %570 = vrcp.f32 %v356_v8  ;;  %v357_v13 = vadd.f32 1.0, %v551_v9 }
 0x11f   :  { %v555_v14 = vpop.eup %554  ;;  %425 = vst [vmem:[%s762_s3 + $0x48] sm:$0xff] %v409_v10  ;;  %572 = vrcp.f32 %v364_v11  ;;  %v365_v15 = vadd.f32 1.0, %v553_v12 }
 0x120   :  { %v557_v16 = vpop.eup %556  ;;  %v386_v17 = vmax.f32 %v555_v14, 0.0  ;;  %574 = vrcp.f32 %v357_v13 }
 0x121   :  { %v559_v18 = vpop.eup %558  ;;  %v394_v19 = vmax.f32 %v557_v16, 0.0  ;;  %576 = vrcp.f32 %v365_v15 }
 0x122   :  { %v561_v20 = vpop.eup %560  ;;  %v402_v21 = vmin.f32 %v386_v17, 1.0  ;;  %v387_v22 = vmax.f32 %v559_v18, 0.0 }
 0x123   :  { %v563_v23 = vpop.eup %562  ;;  %v410_v24 = vmin.f32 %v394_v19, 1.0  ;;  %v395_v25 = vmax.f32 %v561_v20, 0.0 }
 0x124   :  { %v565_v27 = vpop.eup %564  ;;  %418 = vst [vmem:[%s762_s3 + $0x10] sm:$0xff] %v402_v21  ;;  %v403_v28 = vmin.f32 %v387_v22, 1.0  ;;  %v358_v29 = vadd.f32 1.0, %v563_v23 }
 0x125   :  { %v567_v30 = vpop.eup %566  ;;  %426 = vst [vmem:[%s762_s3 + $0x50] sm:$0xff] %v410_v24  ;;  %v411_v31 = vmin.f32 %v395_v25, 1.0  ;;  %v366_v32 = vadd.f32 1.0, %v565_v27 }
 0x126   :  { %v569_v33 = vpop.eup %568  ;;  %419 = vst [vmem:[%s762_s3 + $0x18] sm:$0xff] %v403_v28  ;;  %578 = vrcp.f32 %v358_v29  ;;  %v359_v34 = vadd.f32 1.0, %v567_v30 }
 0x127   :  { %427 = vst [vmem:[%s762_s3 + $0x58] sm:$0xff] %v411_v31  ;;  %580 = vrcp.f32 %v366_v32  ;;  %v367_v35 = vadd.f32 1.0, %v569_v33 }
 0x128   :  { %v571_v36 = vpop.eup %570  ;;  %582 = vrcp.f32 %v359_v34 }
 0x129   :  { %v573_v37 = vpop.eup %572  ;;  %v388_v38 = vmax.f32 %v571_v36, 0.0  ;;  %584 = vrcp.f32 %v367_v35 }
 0x12a   :  { %v575_v39 = vpop.eup %574  ;;  %v396_v40 = vmax.f32 %v573_v37, 0.0 }
 0x12b   :  { %v577_v41 = vpop.eup %576  ;;  %v404_v42 = vmin.f32 %v388_v38, 1.0  ;;  %v389_v43 = vmax.f32 %v575_v39, 0.0 }
 0x12c   :  { %v412_v44 = vmin.f32 %v396_v40, 1.0  ;;  %v397_v45 = vmax.f32 %v577_v41, 0.0 }
 0x12d   :  { %420 = vst [vmem:[%s762_s3 + $0x20] sm:$0xff] %v404_v42  ;;  %v405_v46 = vmin.f32 %v389_v43, 1.0 }
 0x12e   :  { %428 = vst [vmem:[%s762_s3 + $0x60] sm:$0xff] %v412_v44  ;;  %v413_v47 = vmin.f32 %v397_v45, 1.0 }
 0x12f   :  { %421 = vst [vmem:[%s762_s3 + $0x28] sm:$0xff] %v405_v46 }
 0x130   :  { %v579_v48 = vpop.eup %578  ;;  %429 = vst [vmem:[%s762_s3 + $0x68] sm:$0xff] %v413_v47 }
 0x131   :  { %v581_v49 = vpop.eup %580  ;;  %v390_v50 = vmax.f32 %v579_v48, 0.0 }
 0x132   :  { %v583_v51 = vpop.eup %582  ;;  %v398_v52 = vmax.f32 %v581_v49, 0.0 }
 0x133   :  { %v585_v53 = vpop.eup %584  ;;  %v406_v54 = vmin.f32 %v390_v50, 1.0  ;;  %v391_v55 = vmax.f32 %v583_v51, 0.0 }
 0x134   :  { %v414_v56 = vmin.f32 %v398_v52, 1.0  ;;  %v399_v57 = vmax.f32 %v585_v53, 0.0 }
 0x135   :  { %422 = vst [vmem:[%s762_s3 + $0x30] sm:$0xff] %v406_v54  ;;  %v407_v58 = vmin.f32 %v391_v55, 1.0 }
 0x136   :  { %430 = vst [vmem:[%s762_s3 + $0x70] sm:$0xff] %v414_v56  ;;  %v415_v59 = vmin.f32 %v399_v57, 1.0 }
 0x137   :  { %423 = vst [vmem:[%s762_s3 + $0x38] sm:$0xff] %v407_v58 }
 0x138   :  { %431 = vst [vmem:[%s762_s3 + $0x78] sm:$0xff] %v415_v59 }

</bundles_post_ra>
